<compile_context>
chip_gen: v7x
topology: tpu7x:2x2x1
jax: 0.10.0
libtpu: 0.0.40
codegen_flags: <defaults>
</compile_context>

<pallas_src>
import functools

import jax
import jax.numpy as jnp
from jax import lax
from jax.experimental import pallas as pl
from jax.experimental.pallas import tpu as pltpu


def _round_up(x, m):
    return ((x + m - 1) // m) * m


def adaptive_input_kernel(ids_ref,                 # SMEM (N_pad,) int32 (scalar prefetch)
                          head_hbm,                # ANY  (head_vocab+1, D_pad) f32 (pre-fused)
                          t1_hbm,                  # ANY  (osz1+1, h1_pad) f32
                          t2_hbm,                  # ANY  (osz2+1, h2_pad) f32
                          w1_ref,                  # VMEM (h1_pad, D_pad) bf16
                          w2_ref,                  # VMEM (h2_pad, D_pad) bf16
                          out_ref,                 # VMEM (TILE_N, D_pad) f32
                          head_buf, t1_buf, t2_buf,  # VMEM gather buffers
                          sems,                    # DMA semaphores, shape (3,)
                          *, cutoffs, tile_n):
    tile = pl.program_id(0)
    base = tile * tile_n
    c0, c1 = cutoffs
    head_sink = head_hbm.shape[0] - 1   # all-zero sink rows
    t1_sink = t1_hbm.shape[0] - 1
    t2_sink = t2_hbm.shape[0] - 1

    # ---- issue one row-gather DMA per token per cluster (real gather) ----
    # For large TILE_N, chunk the start/wait loops to bound in-flight DMAs.
    def _start(j, carry):
        tok = ids_ref[base + j]
        h_idx = jnp.where(tok < c0, tok, head_sink)
        t1_idx = jnp.where((tok >= c0) & (tok < c1), tok - c0, t1_sink)
        t2_idx = jnp.where(tok >= c1, tok - c1, t2_sink)
        pltpu.make_async_copy(head_hbm.at[h_idx], head_buf.at[j], sems.at[0]).start()
        pltpu.make_async_copy(t1_hbm.at[t1_idx], t1_buf.at[j], sems.at[1]).start()
        pltpu.make_async_copy(t2_hbm.at[t2_idx], t2_buf.at[j], sems.at[2]).start()
        return carry

    lax.fori_loop(0, tile_n, _start, 0, unroll=True)

    def _wait(j, carry):
        pltpu.make_async_copy(head_hbm.at[0], head_buf.at[j], sems.at[0]).wait()
        pltpu.make_async_copy(t1_hbm.at[0], t1_buf.at[j], sems.at[1]).wait()
        pltpu.make_async_copy(t2_hbm.at[0], t2_buf.at[j], sems.at[2]).wait()
        return carry

    lax.fori_loop(0, tile_n, _wait, 0, unroll=True)

    # ---- head is pre-fused: gathered rows ARE the head contribution ----
    out = head_buf[...]
    # ---- tails: (TILE_N, h) x (h, D) bf16 MXU matmul, f32 accumulation ----
    out = out + jnp.dot(t1_buf[...].astype(jnp.bfloat16), w1_ref[...],
                        preferred_element_type=jnp.float32)
    out = out + jnp.dot(t2_buf[...].astype(jnp.bfloat16), w2_ref[...],
                        preferred_element_type=jnp.float32)
    out_ref[...] = out


def init_params(key, in_features, n_classes, cutoffs, div_value=4.0):
    """Synthetic parameters matching AdaptiveInput.__init__ shapes.

    head_bias=False in the reference module, so no bias params. Projection
    weights are stored transposed (h, D).  Kernel-side layouts:
      * head_fused = head_emb @ head_w_t, +1 zero row, D lane-padded to 128.
      * tail embeddings: contraction dim padded to a multiple of 8, +1 zero row.
      * tail projections: bf16, zero-padded to (h_pad, D_pad).
    All zero padding is math-neutral.
    """
    d = in_features
    d_pad = _round_up(d, 128)
    head_size = cutoffs[0]
    full_cutoffs = list(cutoffs) + [n_classes]
    keys = jax.random.split(key, 6)

    head_emb = 0.02 * jax.random.normal(keys[0], (head_size, d), jnp.float32)
    head_w_t = (1.0 / jnp.sqrt(d)) * jax.random.normal(keys[1], (d, d), jnp.float32)
    head_fused = head_emb @ head_w_t                                  # (head, D)
    head_fused = jnp.pad(head_fused, ((0, 1), (0, d_pad - d)))        # sink row + lane pad

    params = {"head_emb": head_emb, "head_w_t": head_w_t, "head_fused": head_fused}

    for i in range(2):
        hsz = int(d // div_value ** (i + 1))
        osz = full_cutoffs[i + 1] - full_cutoffs[i]
        h_pad = _round_up(max(hsz, 1), 8)
        emb = 0.02 * jax.random.normal(keys[2 + 2 * i], (osz, hsz), jnp.float32)
        w_t = (1.0 / jnp.sqrt(max(hsz, 1))) * jax.random.normal(
            keys[3 + 2 * i], (hsz, d), jnp.float32)
        params[f"t{i + 1}_emb_raw"] = emb
        params[f"t{i + 1}_w_raw"] = w_t
        params[f"t{i + 1}_emb"] = jnp.pad(emb, ((0, 1), (0, h_pad - hsz)))
        params[f"t{i + 1}_w_t"] = jnp.pad(
            w_t, ((0, h_pad - hsz), (0, d_pad - d))).astype(jnp.bfloat16)
    return params


def adaptive_input_forward(params, ids, *, in_features, cutoffs, tile_n=8):
    n = ids.shape[0]
    d_pad = params["head_fused"].shape[1]
    h1_pad = params["t1_w_t"].shape[0]
    h2_pad = params["t2_w_t"].shape[0]
    n_pad = _round_up(max(n, 1), tile_n)
    ids_p = jnp.pad(ids.astype(jnp.int32), (0, n_pad - n))  # pad rows sliced off below

    grid_spec = pltpu.PrefetchScalarGridSpec(
        num_scalar_prefetch=1,
        grid=(n_pad // tile_n,),
        in_specs=[
            pl.BlockSpec(memory_space=pl.ANY),                       # head_fused (HBM)
            pl.BlockSpec(memory_space=pl.ANY),                       # t1_emb (HBM)
            pl.BlockSpec(memory_space=pl.ANY),                       # t2_emb (HBM)
            pl.BlockSpec((h1_pad, d_pad), lambda i, ids: (0, 0)),    # W1 (VMEM resident)
            pl.BlockSpec((h2_pad, d_pad), lambda i, ids: (0, 0)),    # W2 (VMEM resident)
        ],
        out_specs=pl.BlockSpec((tile_n, d_pad), lambda i, ids: (i, 0)),
        scratch_shapes=[
            pltpu.VMEM((tile_n, d_pad), jnp.float32),   # gathered fused-head rows
            pltpu.VMEM((tile_n, h1_pad), jnp.float32),  # gathered tail-1 rows
            pltpu.VMEM((tile_n, h2_pad), jnp.float32),  # gathered tail-2 rows
            pltpu.SemaphoreType.DMA((3,)),
        ],
    )
    kernel = functools.partial(adaptive_input_kernel,
                               cutoffs=tuple(cutoffs), tile_n=tile_n)
    out = pl.pallas_call(
        kernel,
        out_shape=jax.ShapeDtypeStruct((n_pad, d_pad), jnp.float32),
        grid_spec=grid_spec,
        compiler_params=pltpu.CompilerParams(
            dimension_semantics=("parallel",)),     # megacore sharding on v7x
    )(ids_p,
      params["head_fused"], params["t1_emb"], params["t2_emb"],
      params["t1_w_t"], params["t2_w_t"])
    return out[:n, :in_features]


def reference_mirrored(params, ids, *, in_features, cutoffs, n_classes):
    """Pure-JAX mirror of the kernel math (same fused head / bf16 tails)."""
    d = in_features
    c0, c1 = cutoffs
    head = params["head_fused"]
    out = jnp.take(head, jnp.where(ids < c0, ids, head.shape[0] - 1), axis=0)[:, :d]
    for i, (low, high) in enumerate([(c0, c1), (c1, n_classes)], start=1):
        emb = params[f"t{i}_emb"]
        w = params[f"t{i}_w_t"]
        idx = jnp.where((ids >= low) & (ids < high), ids - low, emb.shape[0] - 1)
        rows = jnp.take(emb, idx, axis=0).astype(jnp.bfloat16)
        out = out + jnp.dot(rows, w, preferred_element_type=jnp.float32)[:, :d]
    return out


def reference_f32(params, ids, *, in_features, cutoffs, n_classes):
    """Faithful f32 re-implementation of the PyTorch forward (masked clusters)."""
    lows = [0] + list(cutoffs)
    highs = list(cutoffs) + [n_classes]
    out = jnp.zeros((ids.shape[0], in_features), jnp.float32)

    mask = (ids >= lows[0]) & (ids < highs[0])
    h = jnp.take(params["head_emb"], jnp.clip(ids, 0, cutoffs[0] - 1), axis=0)
    out = out + jnp.where(mask[:, None], h @ params["head_w_t"], 0.0)

    for i in range(2):
        low, high = lows[i + 1], highs[i + 1]
        emb, w = params[f"t{i + 1}_emb_raw"], params[f"t{i + 1}_w_raw"]
        idx = jnp.clip(ids - low, 0, emb.shape[0] - 1)
        proj = jnp.take(emb, idx, axis=0) @ w
        m = (ids >= low) & (ids < high)
        out = out + jnp.where(m[:, None], proj, 0.0)
    return out


if __name__ == "__main__":
    # Small, module-consistent config: in_features=32, n_classes=24,
    # cutoffs=[8, 16], div_value=4.0 -> head (8, 32), tail0 h=8, tail1 h=2.
    in_features = 32
    n_classes = 24
    cutoffs = [8, 16]
    n_tokens = 16        # 2 token tiles of 8 -> exercises the pipelined grid

    key = jax.random.PRNGKey(0)
    pkey, ikey = jax.random.split(key)
    params = init_params(pkey, in_features, n_classes, cutoffs, div_value=4.0)

    ids = jax.random.randint(ikey, (n_tokens,), 0, n_classes, dtype=jnp.int32)
    # Host-side range check mirroring the module's RuntimeError for bad targets.
    assert int(ids.min()) >= 0 and int(ids.max()) < n_classes, \
        "Target values should be in [0, n_classes - 1]"

    out = adaptive_input_forward(params, ids,
                                 in_features=in_features, cutoffs=cutoffs,
                                 tile_n=8)
    out = jax.block_until_ready(out)
    assert out.shape == (n_tokens, in_features)

    ref_k = reference_mirrored(params, ids, in_features=in_features,
                               cutoffs=cutoffs, n_classes=n_classes)
    assert jnp.allclose(out, ref_k, atol=1e-3, rtol=1e-3), \
        "mismatch vs mirrored reference"

    ref32 = reference_f32(params, ids, in_features=in_features,
                          cutoffs=cutoffs, n_classes=n_classes)
    assert jnp.allclose(out, ref32, atol=5e-3, rtol=5e-2), \
        "mismatch vs f32 module reference"

    print("KERNEL_OK")
</pallas_src>

<mosaic_0001>
module attributes {stable_mosaic.version = 11 : i64} {
  func.func @adaptive_input_kernel(%arg0: i32, %arg1: memref<16xi32, #tpu.memory_space<smem>>, %arg2: memref<9x128xf32, #tpu.memory_space<any>>, %arg3: memref<9x8xf32, #tpu.memory_space<any>>, %arg4: memref<9x8xf32, #tpu.memory_space<any>>, %arg5: memref<8x128xbf16, #tpu.memory_space<vmem>>, %arg6: memref<8x128xbf16, #tpu.memory_space<vmem>>, %arg7: memref<8x128xf32, #tpu.memory_space<vmem>>, %arg8: memref<8x128xf32, #tpu.memory_space<vmem>>, %arg9: memref<8x8xf32, #tpu.memory_space<vmem>>, %arg10: memref<8x8xf32, #tpu.memory_space<vmem>>, %arg11: memref<3x!tpu.dma_semaphore, #tpu.memory_space<semaphore_mem>>) attributes {dimension_semantics = [#tpu.dimension_semantics<parallel>], iteration_bounds = array<i64: 2>, scalar_prefetch = 1 : i64, scratch_operands = 4 : i64, tpu.core_type = #tpu.core_type<tc>, window_params = [{}, {}, {}, {pipeline_mode = #tpu.pipeline_mode<synchronous>, transform_indices = @transform_3, window_bounds = array<i64: 8, 128>}, {pipeline_mode = #tpu.pipeline_mode<synchronous>, transform_indices = @transform_4, window_bounds = array<i64: 8, 128>}, {transform_indices = @transform_5, window_bounds = array<i64: 8, 128>}]} {
    %c8_i32 = arith.constant 8 : i32
    %0 = arith.muli %arg0, %c8_i32 : i32
    %c0_i32 = arith.constant 0 : i32
    %1 = arith.addi %0, %c0_i32 : i32
    %2 = arith.index_cast %1 : i32 to index
    %3 = memref.load %arg1[%2] : memref<16xi32, #tpu.memory_space<smem>>
    %c8_i32_0 = arith.constant 8 : i32
    %4 = arith.cmpi slt, %3, %c8_i32_0 : i32
    %c8_i32_1 = arith.constant 8 : i32
    %5 = arith.select %4, %3, %c8_i32_1 : i32
    %c8_i32_2 = arith.constant 8 : i32
    %6 = arith.cmpi sge, %3, %c8_i32_2 : i32
    %c16_i32 = arith.constant 16 : i32
    %7 = arith.cmpi slt, %3, %c16_i32 : i32
    %8 = arith.andi %6, %7 : i1
    %c8_i32_3 = arith.constant 8 : i32
    %9 = arith.subi %3, %c8_i32_3 : i32
    %c8_i32_4 = arith.constant 8 : i32
    %10 = arith.select %8, %9, %c8_i32_4 : i32
    %c16_i32_5 = arith.constant 16 : i32
    %11 = arith.cmpi sge, %3, %c16_i32_5 : i32
    %c16_i32_6 = arith.constant 16 : i32
    %12 = arith.subi %3, %c16_i32_6 : i32
    %c8_i32_7 = arith.constant 8 : i32
    %13 = arith.select %11, %12, %c8_i32_7 : i32
    %c0_i32_8 = arith.constant 0 : i32
    %c0_i32_9 = arith.constant 0 : i32
    %14 = tpu.memref_slice %arg2[%5, %c0_i32_9] : memref<9x128xf32, #tpu.memory_space<any>> -> memref<1x128xf32, #tpu.memory_space<any>>
    %15 = tpu.memref_squeeze %14 : memref<1x128xf32, #tpu.memory_space<any>> -> memref<128xf32, #tpu.memory_space<any>>
    %c0_i32_10 = arith.constant 0 : i32
    %16 = tpu.memref_slice %arg8[%c0_i32, %c0_i32_10] : memref<8x128xf32, #tpu.memory_space<vmem>> -> memref<1x128xf32, #tpu.memory_space<vmem>>
    %17 = tpu.memref_squeeze %16 : memref<1x128xf32, #tpu.memory_space<vmem>> -> memref<128xf32, #tpu.memory_space<vmem>>
    %18 = tpu.memref_slice %arg11[%c0_i32_8] : memref<3x!tpu.dma_semaphore, #tpu.memory_space<semaphore_mem>> -> memref<1x!tpu.dma_semaphore, #tpu.memory_space<semaphore_mem>>
    %19 = tpu.memref_squeeze %18 : memref<1x!tpu.dma_semaphore, #tpu.memory_space<semaphore_mem>> -> memref<!tpu.dma_semaphore, #tpu.memory_space<semaphore_mem>>
    tpu.enqueue_dma source(%15 : memref<128xf32, #tpu.memory_space<any>>) target(%17 : memref<128xf32, #tpu.memory_space<vmem>>) target_semaphore(%19 : memref<!tpu.dma_semaphore, #tpu.memory_space<semaphore_mem>>)
    %c1_i32 = arith.constant 1 : i32
    %c0_i32_11 = arith.constant 0 : i32
    %20 = tpu.memref_slice %arg3[%10, %c0_i32_11] : memref<9x8xf32, #tpu.memory_space<any>> -> memref<1x8xf32, #tpu.memory_space<any>>
    %21 = tpu.memref_squeeze %20 : memref<1x8xf32, #tpu.memory_space<any>> -> memref<8xf32, #tpu.memory_space<any>>
    %c0_i32_12 = arith.constant 0 : i32
    %22 = tpu.memref_slice %arg9[%c0_i32, %c0_i32_12] : memref<8x8xf32, #tpu.memory_space<vmem>> -> memref<1x8xf32, #tpu.memory_space<vmem>>
    %23 = tpu.memref_squeeze %22 : memref<1x8xf32, #tpu.memory_space<vmem>> -> memref<8xf32, #tpu.memory_space<vmem>>
    %24 = tpu.memref_slice %arg11[%c1_i32] : memref<3x!tpu.dma_semaphore, #tpu.memory_space<semaphore_mem>> -> memref<1x!tpu.dma_semaphore, #tpu.memory_space<semaphore_mem>>
    %25 = tpu.memref_squeeze %24 : memref<1x!tpu.dma_semaphore, #tpu.memory_space<semaphore_mem>> -> memref<!tpu.dma_semaphore, #tpu.memory_space<semaphore_mem>>
    tpu.enqueue_dma source(%21 : memref<8xf32, #tpu.memory_space<any>>) target(%23 : memref<8xf32, #tpu.memory_space<vmem>>) target_semaphore(%25 : memref<!tpu.dma_semaphore, #tpu.memory_space<semaphore_mem>>)
    %c2_i32 = arith.constant 2 : i32
    %c0_i32_13 = arith.constant 0 : i32
    %26 = tpu.memref_slice %arg4[%13, %c0_i32_13] : memref<9x8xf32, #tpu.memory_space<any>> -> memref<1x8xf32, #tpu.memory_space<any>>
    %27 = tpu.memref_squeeze %26 : memref<1x8xf32, #tpu.memory_space<any>> -> memref<8xf32, #tpu.memory_space<any>>
    %c0_i32_14 = arith.constant 0 : i32
    %28 = tpu.memref_slice %arg10[%c0_i32, %c0_i32_14] : memref<8x8xf32, #tpu.memory_space<vmem>> -> memref<1x8xf32, #tpu.memory_space<vmem>>
    %29 = tpu.memref_squeeze %28 : memref<1x8xf32, #tpu.memory_space<vmem>> -> memref<8xf32, #tpu.memory_space<vmem>>
    %30 = tpu.memref_slice %arg11[%c2_i32] : memref<3x!tpu.dma_semaphore, #tpu.memory_space<semaphore_mem>> -> memref<1x!tpu.dma_semaphore, #tpu.memory_space<semaphore_mem>>
    %31 = tpu.memref_squeeze %30 : memref<1x!tpu.dma_semaphore, #tpu.memory_space<semaphore_mem>> -> memref<!tpu.dma_semaphore, #tpu.memory_space<semaphore_mem>>
    tpu.enqueue_dma source(%27 : memref<8xf32, #tpu.memory_space<any>>) target(%29 : memref<8xf32, #tpu.memory_space<vmem>>) target_semaphore(%31 : memref<!tpu.dma_semaphore, #tpu.memory_space<semaphore_mem>>)
    %c1_i32_15 = arith.constant 1 : i32
    %32 = arith.addi %0, %c1_i32_15 : i32
    %33 = arith.index_cast %32 : i32 to index
    %34 = memref.load %arg1[%33] : memref<16xi32, #tpu.memory_space<smem>>
    %c8_i32_16 = arith.constant 8 : i32
    %35 = arith.cmpi slt, %34, %c8_i32_16 : i32
    %c8_i32_17 = arith.constant 8 : i32
    %36 = arith.select %35, %34, %c8_i32_17 : i32
    %c8_i32_18 = arith.constant 8 : i32
    %37 = arith.cmpi sge, %34, %c8_i32_18 : i32
    %c16_i32_19 = arith.constant 16 : i32
    %38 = arith.cmpi slt, %34, %c16_i32_19 : i32
    %39 = arith.andi %37, %38 : i1
    %c8_i32_20 = arith.constant 8 : i32
    %40 = arith.subi %34, %c8_i32_20 : i32
    %c8_i32_21 = arith.constant 8 : i32
    %41 = arith.select %39, %40, %c8_i32_21 : i32
    %c16_i32_22 = arith.constant 16 : i32
    %42 = arith.cmpi sge, %34, %c16_i32_22 : i32
    %c16_i32_23 = arith.constant 16 : i32
    %43 = arith.subi %34, %c16_i32_23 : i32
    %c8_i32_24 = arith.constant 8 : i32
    %44 = arith.select %42, %43, %c8_i32_24 : i32
    %c0_i32_25 = arith.constant 0 : i32
    %c0_i32_26 = arith.constant 0 : i32
    %45 = tpu.memref_slice %arg2[%36, %c0_i32_26] : memref<9x128xf32, #tpu.memory_space<any>> -> memref<1x128xf32, #tpu.memory_space<any>>
    %46 = tpu.memref_squeeze %45 : memref<1x128xf32, #tpu.memory_space<any>> -> memref<128xf32, #tpu.memory_space<any>>
    %c0_i32_27 = arith.constant 0 : i32
    %47 = tpu.memref_slice %arg8[%c1_i32_15, %c0_i32_27] : memref<8x128xf32, #tpu.memory_space<vmem>> -> memref<1x128xf32, #tpu.memory_space<vmem>>
    %48 = tpu.memref_squeeze %47 : memref<1x128xf32, #tpu.memory_space<vmem>> -> memref<128xf32, #tpu.memory_space<vmem>>
    %49 = tpu.memref_slice %arg11[%c0_i32_25] : memref<3x!tpu.dma_semaphore, #tpu.memory_space<semaphore_mem>> -> memref<1x!tpu.dma_semaphore, #tpu.memory_space<semaphore_mem>>
    %50 = tpu.memref_squeeze %49 : memref<1x!tpu.dma_semaphore, #tpu.memory_space<semaphore_mem>> -> memref<!tpu.dma_semaphore, #tpu.memory_space<semaphore_mem>>
    tpu.enqueue_dma source(%46 : memref<128xf32, #tpu.memory_space<any>>) target(%48 : memref<128xf32, #tpu.memory_space<vmem>>) target_semaphore(%50 : memref<!tpu.dma_semaphore, #tpu.memory_space<semaphore_mem>>)
    %c1_i32_28 = arith.constant 1 : i32
    %c0_i32_29 = arith.constant 0 : i32
    %51 = tpu.memref_slice %arg3[%41, %c0_i32_29] : memref<9x8xf32, #tpu.memory_space<any>> -> memref<1x8xf32, #tpu.memory_space<any>>
    %52 = tpu.memref_squeeze %51 : memref<1x8xf32, #tpu.memory_space<any>> -> memref<8xf32, #tpu.memory_space<any>>
    %c0_i32_30 = arith.constant 0 : i32
    %53 = tpu.memref_slice %arg9[%c1_i32_15, %c0_i32_30] : memref<8x8xf32, #tpu.memory_space<vmem>> -> memref<1x8xf32, #tpu.memory_space<vmem>>
    %54 = tpu.memref_squeeze %53 : memref<1x8xf32, #tpu.memory_space<vmem>> -> memref<8xf32, #tpu.memory_space<vmem>>
    %55 = tpu.memref_slice %arg11[%c1_i32_28] : memref<3x!tpu.dma_semaphore, #tpu.memory_space<semaphore_mem>> -> memref<1x!tpu.dma_semaphore, #tpu.memory_space<semaphore_mem>>
    %56 = tpu.memref_squeeze %55 : memref<1x!tpu.dma_semaphore, #tpu.memory_space<semaphore_mem>> -> memref<!tpu.dma_semaphore, #tpu.memory_space<semaphore_mem>>
    tpu.enqueue_dma source(%52 : memref<8xf32, #tpu.memory_space<any>>) target(%54 : memref<8xf32, #tpu.memory_space<vmem>>) target_semaphore(%56 : memref<!tpu.dma_semaphore, #tpu.memory_space<semaphore_mem>>)
    %c2_i32_31 = arith.constant 2 : i32
    %c0_i32_32 = arith.constant 0 : i32
    %57 = tpu.memref_slice %arg4[%44, %c0_i32_32] : memref<9x8xf32, #tpu.memory_space<any>> -> memref<1x8xf32, #tpu.memory_space<any>>
    %58 = tpu.memref_squeeze %57 : memref<1x8xf32, #tpu.memory_space<any>> -> memref<8xf32, #tpu.memory_space<any>>
    %c0_i32_33 = arith.constant 0 : i32
    %59 = tpu.memref_slice %arg10[%c1_i32_15, %c0_i32_33] : memref<8x8xf32, #tpu.memory_space<vmem>> -> memref<1x8xf32, #tpu.memory_space<vmem>>
    %60 = tpu.memref_squeeze %59 : memref<1x8xf32, #tpu.memory_space<vmem>> -> memref<8xf32, #tpu.memory_space<vmem>>
    %61 = tpu.memref_slice %arg11[%c2_i32_31] : memref<3x!tpu.dma_semaphore, #tpu.memory_space<semaphore_mem>> -> memref<1x!tpu.dma_semaphore, #tpu.memory_space<semaphore_mem>>
    %62 = tpu.memref_squeeze %61 : memref<1x!tpu.dma_semaphore, #tpu.memory_space<semaphore_mem>> -> memref<!tpu.dma_semaphore, #tpu.memory_space<semaphore_mem>>
    tpu.enqueue_dma source(%58 : memref<8xf32, #tpu.memory_space<any>>) target(%60 : memref<8xf32, #tpu.memory_space<vmem>>) target_semaphore(%62 : memref<!tpu.dma_semaphore, #tpu.memory_space<semaphore_mem>>)
    %c2_i32_34 = arith.constant 2 : i32
    %63 = arith.addi %0, %c2_i32_34 : i32
    %64 = arith.index_cast %63 : i32 to index
    %65 = memref.load %arg1[%64] : memref<16xi32, #tpu.memory_space<smem>>
    %c8_i32_35 = arith.constant 8 : i32
    %66 = arith.cmpi slt, %65, %c8_i32_35 : i32
    %c8_i32_36 = arith.constant 8 : i32
    %67 = arith.select %66, %65, %c8_i32_36 : i32
    %c8_i32_37 = arith.constant 8 : i32
    %68 = arith.cmpi sge, %65, %c8_i32_37 : i32
    %c16_i32_38 = arith.constant 16 : i32
    %69 = arith.cmpi slt, %65, %c16_i32_38 : i32
    %70 = arith.andi %68, %69 : i1
    %c8_i32_39 = arith.constant 8 : i32
    %71 = arith.subi %65, %c8_i32_39 : i32
    %c8_i32_40 = arith.constant 8 : i32
    %72 = arith.select %70, %71, %c8_i32_40 : i32
    %c16_i32_41 = arith.constant 16 : i32
    %73 = arith.cmpi sge, %65, %c16_i32_41 : i32
    %c16_i32_42 = arith.constant 16 : i32
    %74 = arith.subi %65, %c16_i32_42 : i32
    %c8_i32_43 = arith.constant 8 : i32
    %75 = arith.select %73, %74, %c8_i32_43 : i32
    %c0_i32_44 = arith.constant 0 : i32
    %c0_i32_45 = arith.constant 0 : i32
    %76 = tpu.memref_slice %arg2[%67, %c0_i32_45] : memref<9x128xf32, #tpu.memory_space<any>> -> memref<1x128xf32, #tpu.memory_space<any>>
    %77 = tpu.memref_squeeze %76 : memref<1x128xf32, #tpu.memory_space<any>> -> memref<128xf32, #tpu.memory_space<any>>
    %c0_i32_46 = arith.constant 0 : i32
    %78 = tpu.memref_slice %arg8[%c2_i32_34, %c0_i32_46] : memref<8x128xf32, #tpu.memory_space<vmem>> -> memref<1x128xf32, #tpu.memory_space<vmem>>
    %79 = tpu.memref_squeeze %78 : memref<1x128xf32, #tpu.memory_space<vmem>> -> memref<128xf32, #tpu.memory_space<vmem>>
    %80 = tpu.memref_slice %arg11[%c0_i32_44] : memref<3x!tpu.dma_semaphore, #tpu.memory_space<semaphore_mem>> -> memref<1x!tpu.dma_semaphore, #tpu.memory_space<semaphore_mem>>
    %81 = tpu.memref_squeeze %80 : memref<1x!tpu.dma_semaphore, #tpu.memory_space<semaphore_mem>> -> memref<!tpu.dma_semaphore, #tpu.memory_space<semaphore_mem>>
    tpu.enqueue_dma source(%77 : memref<128xf32, #tpu.memory_space<any>>) target(%79 : memref<128xf32, #tpu.memory_space<vmem>>) target_semaphore(%81 : memref<!tpu.dma_semaphore, #tpu.memory_space<semaphore_mem>>)
    %c1_i32_47 = arith.constant 1 : i32
    %c0_i32_48 = arith.constant 0 : i32
    %82 = tpu.memref_slice %arg3[%72, %c0_i32_48] : memref<9x8xf32, #tpu.memory_space<any>> -> memref<1x8xf32, #tpu.memory_space<any>>
    %83 = tpu.memref_squeeze %82 : memref<1x8xf32, #tpu.memory_space<any>> -> memref<8xf32, #tpu.memory_space<any>>
    %c0_i32_49 = arith.constant 0 : i32
    %84 = tpu.memref_slice %arg9[%c2_i32_34, %c0_i32_49] : memref<8x8xf32, #tpu.memory_space<vmem>> -> memref<1x8xf32, #tpu.memory_space<vmem>>
    %85 = tpu.memref_squeeze %84 : memref<1x8xf32, #tpu.memory_space<vmem>> -> memref<8xf32, #tpu.memory_space<vmem>>
    %86 = tpu.memref_slice %arg11[%c1_i32_47] : memref<3x!tpu.dma_semaphore, #tpu.memory_space<semaphore_mem>> -> memref<1x!tpu.dma_semaphore, #tpu.memory_space<semaphore_mem>>
    %87 = tpu.memref_squeeze %86 : memref<1x!tpu.dma_semaphore, #tpu.memory_space<semaphore_mem>> -> memref<!tpu.dma_semaphore, #tpu.memory_space<semaphore_mem>>
    tpu.enqueue_dma source(%83 : memref<8xf32, #tpu.memory_space<any>>) target(%85 : memref<8xf32, #tpu.memory_space<vmem>>) target_semaphore(%87 : memref<!tpu.dma_semaphore, #tpu.memory_space<semaphore_mem>>)
    %c2_i32_50 = arith.constant 2 : i32
    %c0_i32_51 = arith.constant 0 : i32
    %88 = tpu.memref_slice %arg4[%75, %c0_i32_51] : memref<9x8xf32, #tpu.memory_space<any>> -> memref<1x8xf32, #tpu.memory_space<any>>
    %89 = tpu.memref_squeeze %88 : memref<1x8xf32, #tpu.memory_space<any>> -> memref<8xf32, #tpu.memory_space<any>>
    %c0_i32_52 = arith.constant 0 : i32
    %90 = tpu.memref_slice %arg10[%c2_i32_34, %c0_i32_52] : memref<8x8xf32, #tpu.memory_space<vmem>> -> memref<1x8xf32, #tpu.memory_space<vmem>>
    %91 = tpu.memref_squeeze %90 : memref<1x8xf32, #tpu.memory_space<vmem>> -> memref<8xf32, #tpu.memory_space<vmem>>
    %92 = tpu.memref_slice %arg11[%c2_i32_50] : memref<3x!tpu.dma_semaphore, #tpu.memory_space<semaphore_mem>> -> memref<1x!tpu.dma_semaphore, #tpu.memory_space<semaphore_mem>>
    %93 = tpu.memref_squeeze %92 : memref<1x!tpu.dma_semaphore, #tpu.memory_space<semaphore_mem>> -> memref<!tpu.dma_semaphore, #tpu.memory_space<semaphore_mem>>
    tpu.enqueue_dma source(%89 : memref<8xf32, #tpu.memory_space<any>>) target(%91 : memref<8xf32, #tpu.memory_space<vmem>>) target_semaphore(%93 : memref<!tpu.dma_semaphore, #tpu.memory_space<semaphore_mem>>)
    %c3_i32 = arith.constant 3 : i32
    %94 = arith.addi %0, %c3_i32 : i32
    %95 = arith.index_cast %94 : i32 to index
    %96 = memref.load %arg1[%95] : memref<16xi32, #tpu.memory_space<smem>>
    %c8_i32_53 = arith.constant 8 : i32
    %97 = arith.cmpi slt, %96, %c8_i32_53 : i32
    %c8_i32_54 = arith.constant 8 : i32
    %98 = arith.select %97, %96, %c8_i32_54 : i32
    %c8_i32_55 = arith.constant 8 : i32
    %99 = arith.cmpi sge, %96, %c8_i32_55 : i32
    %c16_i32_56 = arith.constant 16 : i32
    %100 = arith.cmpi slt, %96, %c16_i32_56 : i32
    %101 = arith.andi %99, %100 : i1
    %c8_i32_57 = arith.constant 8 : i32
    %102 = arith.subi %96, %c8_i32_57 : i32
    %c8_i32_58 = arith.constant 8 : i32
    %103 = arith.select %101, %102, %c8_i32_58 : i32
    %c16_i32_59 = arith.constant 16 : i32
    %104 = arith.cmpi sge, %96, %c16_i32_59 : i32
    %c16_i32_60 = arith.constant 16 : i32
    %105 = arith.subi %96, %c16_i32_60 : i32
    %c8_i32_61 = arith.constant 8 : i32
    %106 = arith.select %104, %105, %c8_i32_61 : i32
    %c0_i32_62 = arith.constant 0 : i32
    %c0_i32_63 = arith.constant 0 : i32
    %107 = tpu.memref_slice %arg2[%98, %c0_i32_63] : memref<9x128xf32, #tpu.memory_space<any>> -> memref<1x128xf32, #tpu.memory_space<any>>
    %108 = tpu.memref_squeeze %107 : memref<1x128xf32, #tpu.memory_space<any>> -> memref<128xf32, #tpu.memory_space<any>>
    %c0_i32_64 = arith.constant 0 : i32
    %109 = tpu.memref_slice %arg8[%c3_i32, %c0_i32_64] : memref<8x128xf32, #tpu.memory_space<vmem>> -> memref<1x128xf32, #tpu.memory_space<vmem>>
    %110 = tpu.memref_squeeze %109 : memref<1x128xf32, #tpu.memory_space<vmem>> -> memref<128xf32, #tpu.memory_space<vmem>>
    %111 = tpu.memref_slice %arg11[%c0_i32_62] : memref<3x!tpu.dma_semaphore, #tpu.memory_space<semaphore_mem>> -> memref<1x!tpu.dma_semaphore, #tpu.memory_space<semaphore_mem>>
    %112 = tpu.memref_squeeze %111 : memref<1x!tpu.dma_semaphore, #tpu.memory_space<semaphore_mem>> -> memref<!tpu.dma_semaphore, #tpu.memory_space<semaphore_mem>>
    tpu.enqueue_dma source(%108 : memref<128xf32, #tpu.memory_space<any>>) target(%110 : memref<128xf32, #tpu.memory_space<vmem>>) target_semaphore(%112 : memref<!tpu.dma_semaphore, #tpu.memory_space<semaphore_mem>>)
    %c1_i32_65 = arith.constant 1 : i32
    %c0_i32_66 = arith.constant 0 : i32
    %113 = tpu.memref_slice %arg3[%103, %c0_i32_66] : memref<9x8xf32, #tpu.memory_space<any>> -> memref<1x8xf32, #tpu.memory_space<any>>
    %114 = tpu.memref_squeeze %113 : memref<1x8xf32, #tpu.memory_space<any>> -> memref<8xf32, #tpu.memory_space<any>>
    %c0_i32_67 = arith.constant 0 : i32
    %115 = tpu.memref_slice %arg9[%c3_i32, %c0_i32_67] : memref<8x8xf32, #tpu.memory_space<vmem>> -> memref<1x8xf32, #tpu.memory_space<vmem>>
    %116 = tpu.memref_squeeze %115 : memref<1x8xf32, #tpu.memory_space<vmem>> -> memref<8xf32, #tpu.memory_space<vmem>>
    %117 = tpu.memref_slice %arg11[%c1_i32_65] : memref<3x!tpu.dma_semaphore, #tpu.memory_space<semaphore_mem>> -> memref<1x!tpu.dma_semaphore, #tpu.memory_space<semaphore_mem>>
    %118 = tpu.memref_squeeze %117 : memref<1x!tpu.dma_semaphore, #tpu.memory_space<semaphore_mem>> -> memref<!tpu.dma_semaphore, #tpu.memory_space<semaphore_mem>>
    tpu.enqueue_dma source(%114 : memref<8xf32, #tpu.memory_space<any>>) target(%116 : memref<8xf32, #tpu.memory_space<vmem>>) target_semaphore(%118 : memref<!tpu.dma_semaphore, #tpu.memory_space<semaphore_mem>>)
    %c2_i32_68 = arith.constant 2 : i32
    %c0_i32_69 = arith.constant 0 : i32
    %119 = tpu.memref_slice %arg4[%106, %c0_i32_69] : memref<9x8xf32, #tpu.memory_space<any>> -> memref<1x8xf32, #tpu.memory_space<any>>
    %120 = tpu.memref_squeeze %119 : memref<1x8xf32, #tpu.memory_space<any>> -> memref<8xf32, #tpu.memory_space<any>>
    %c0_i32_70 = arith.constant 0 : i32
    %121 = tpu.memref_slice %arg10[%c3_i32, %c0_i32_70] : memref<8x8xf32, #tpu.memory_space<vmem>> -> memref<1x8xf32, #tpu.memory_space<vmem>>
    %122 = tpu.memref_squeeze %121 : memref<1x8xf32, #tpu.memory_space<vmem>> -> memref<8xf32, #tpu.memory_space<vmem>>
    %123 = tpu.memref_slice %arg11[%c2_i32_68] : memref<3x!tpu.dma_semaphore, #tpu.memory_space<semaphore_mem>> -> memref<1x!tpu.dma_semaphore, #tpu.memory_space<semaphore_mem>>
    %124 = tpu.memref_squeeze %123 : memref<1x!tpu.dma_semaphore, #tpu.memory_space<semaphore_mem>> -> memref<!tpu.dma_semaphore, #tpu.memory_space<semaphore_mem>>
    tpu.enqueue_dma source(%120 : memref<8xf32, #tpu.memory_space<any>>) target(%122 : memref<8xf32, #tpu.memory_space<vmem>>) target_semaphore(%124 : memref<!tpu.dma_semaphore, #tpu.memory_space<semaphore_mem>>)
    %c4_i32 = arith.constant 4 : i32
    %125 = arith.addi %0, %c4_i32 : i32
    %126 = arith.index_cast %125 : i32 to index
    %127 = memref.load %arg1[%126] : memref<16xi32, #tpu.memory_space<smem>>
    %c8_i32_71 = arith.constant 8 : i32
    %128 = arith.cmpi slt, %127, %c8_i32_71 : i32
    %c8_i32_72 = arith.constant 8 : i32
    %129 = arith.select %128, %127, %c8_i32_72 : i32
    %c8_i32_73 = arith.constant 8 : i32
    %130 = arith.cmpi sge, %127, %c8_i32_73 : i32
    %c16_i32_74 = arith.constant 16 : i32
    %131 = arith.cmpi slt, %127, %c16_i32_74 : i32
    %132 = arith.andi %130, %131 : i1
    %c8_i32_75 = arith.constant 8 : i32
    %133 = arith.subi %127, %c8_i32_75 : i32
    %c8_i32_76 = arith.constant 8 : i32
    %134 = arith.select %132, %133, %c8_i32_76 : i32
    %c16_i32_77 = arith.constant 16 : i32
    %135 = arith.cmpi sge, %127, %c16_i32_77 : i32
    %c16_i32_78 = arith.constant 16 : i32
    %136 = arith.subi %127, %c16_i32_78 : i32
    %c8_i32_79 = arith.constant 8 : i32
    %137 = arith.select %135, %136, %c8_i32_79 : i32
    %c0_i32_80 = arith.constant 0 : i32
    %c0_i32_81 = arith.constant 0 : i32
    %138 = tpu.memref_slice %arg2[%129, %c0_i32_81] : memref<9x128xf32, #tpu.memory_space<any>> -> memref<1x128xf32, #tpu.memory_space<any>>
    %139 = tpu.memref_squeeze %138 : memref<1x128xf32, #tpu.memory_space<any>> -> memref<128xf32, #tpu.memory_space<any>>
    %c0_i32_82 = arith.constant 0 : i32
    %140 = tpu.memref_slice %arg8[%c4_i32, %c0_i32_82] : memref<8x128xf32, #tpu.memory_space<vmem>> -> memref<1x128xf32, #tpu.memory_space<vmem>>
    %141 = tpu.memref_squeeze %140 : memref<1x128xf32, #tpu.memory_space<vmem>> -> memref<128xf32, #tpu.memory_space<vmem>>
    %142 = tpu.memref_slice %arg11[%c0_i32_80] : memref<3x!tpu.dma_semaphore, #tpu.memory_space<semaphore_mem>> -> memref<1x!tpu.dma_semaphore, #tpu.memory_space<semaphore_mem>>
    %143 = tpu.memref_squeeze %142 : memref<1x!tpu.dma_semaphore, #tpu.memory_space<semaphore_mem>> -> memref<!tpu.dma_semaphore, #tpu.memory_space<semaphore_mem>>
    tpu.enqueue_dma source(%139 : memref<128xf32, #tpu.memory_space<any>>) target(%141 : memref<128xf32, #tpu.memory_space<vmem>>) target_semaphore(%143 : memref<!tpu.dma_semaphore, #tpu.memory_space<semaphore_mem>>)
    %c1_i32_83 = arith.constant 1 : i32
    %c0_i32_84 = arith.constant 0 : i32
    %144 = tpu.memref_slice %arg3[%134, %c0_i32_84] : memref<9x8xf32, #tpu.memory_space<any>> -> memref<1x8xf32, #tpu.memory_space<any>>
    %145 = tpu.memref_squeeze %144 : memref<1x8xf32, #tpu.memory_space<any>> -> memref<8xf32, #tpu.memory_space<any>>
    %c0_i32_85 = arith.constant 0 : i32
    %146 = tpu.memref_slice %arg9[%c4_i32, %c0_i32_85] : memref<8x8xf32, #tpu.memory_space<vmem>> -> memref<1x8xf32, #tpu.memory_space<vmem>>
    %147 = tpu.memref_squeeze %146 : memref<1x8xf32, #tpu.memory_space<vmem>> -> memref<8xf32, #tpu.memory_space<vmem>>
    %148 = tpu.memref_slice %arg11[%c1_i32_83] : memref<3x!tpu.dma_semaphore, #tpu.memory_space<semaphore_mem>> -> memref<1x!tpu.dma_semaphore, #tpu.memory_space<semaphore_mem>>
    %149 = tpu.memref_squeeze %148 : memref<1x!tpu.dma_semaphore, #tpu.memory_space<semaphore_mem>> -> memref<!tpu.dma_semaphore, #tpu.memory_space<semaphore_mem>>
    tpu.enqueue_dma source(%145 : memref<8xf32, #tpu.memory_space<any>>) target(%147 : memref<8xf32, #tpu.memory_space<vmem>>) target_semaphore(%149 : memref<!tpu.dma_semaphore, #tpu.memory_space<semaphore_mem>>)
    %c2_i32_86 = arith.constant 2 : i32
    %c0_i32_87 = arith.constant 0 : i32
    %150 = tpu.memref_slice %arg4[%137, %c0_i32_87] : memref<9x8xf32, #tpu.memory_space<any>> -> memref<1x8xf32, #tpu.memory_space<any>>
    %151 = tpu.memref_squeeze %150 : memref<1x8xf32, #tpu.memory_space<any>> -> memref<8xf32, #tpu.memory_space<any>>
    %c0_i32_88 = arith.constant 0 : i32
    %152 = tpu.memref_slice %arg10[%c4_i32, %c0_i32_88] : memref<8x8xf32, #tpu.memory_space<vmem>> -> memref<1x8xf32, #tpu.memory_space<vmem>>
    %153 = tpu.memref_squeeze %152 : memref<1x8xf32, #tpu.memory_space<vmem>> -> memref<8xf32, #tpu.memory_space<vmem>>
    %154 = tpu.memref_slice %arg11[%c2_i32_86] : memref<3x!tpu.dma_semaphore, #tpu.memory_space<semaphore_mem>> -> memref<1x!tpu.dma_semaphore, #tpu.memory_space<semaphore_mem>>
    %155 = tpu.memref_squeeze %154 : memref<1x!tpu.dma_semaphore, #tpu.memory_space<semaphore_mem>> -> memref<!tpu.dma_semaphore, #tpu.memory_space<semaphore_mem>>
    tpu.enqueue_dma source(%151 : memref<8xf32, #tpu.memory_space<any>>) target(%153 : memref<8xf32, #tpu.memory_space<vmem>>) target_semaphore(%155 : memref<!tpu.dma_semaphore, #tpu.memory_space<semaphore_mem>>)
    %c5_i32 = arith.constant 5 : i32
    %156 = arith.addi %0, %c5_i32 : i32
    %157 = arith.index_cast %156 : i32 to index
    %158 = memref.load %arg1[%157] : memref<16xi32, #tpu.memory_space<smem>>
    %c8_i32_89 = arith.constant 8 : i32
    %159 = arith.cmpi slt, %158, %c8_i32_89 : i32
    %c8_i32_90 = arith.constant 8 : i32
    %160 = arith.select %159, %158, %c8_i32_90 : i32
    %c8_i32_91 = arith.constant 8 : i32
    %161 = arith.cmpi sge, %158, %c8_i32_91 : i32
    %c16_i32_92 = arith.constant 16 : i32
    %162 = arith.cmpi slt, %158, %c16_i32_92 : i32
    %163 = arith.andi %161, %162 : i1
    %c8_i32_93 = arith.constant 8 : i32
    %164 = arith.subi %158, %c8_i32_93 : i32
    %c8_i32_94 = arith.constant 8 : i32
    %165 = arith.select %163, %164, %c8_i32_94 : i32
    %c16_i32_95 = arith.constant 16 : i32
    %166 = arith.cmpi sge, %158, %c16_i32_95 : i32
    %c16_i32_96 = arith.constant 16 : i32
    %167 = arith.subi %158, %c16_i32_96 : i32
    %c8_i32_97 = arith.constant 8 : i32
    %168 = arith.select %166, %167, %c8_i32_97 : i32
    %c0_i32_98 = arith.constant 0 : i32
    %c0_i32_99 = arith.constant 0 : i32
    %169 = tpu.memref_slice %arg2[%160, %c0_i32_99] : memref<9x128xf32, #tpu.memory_space<any>> -> memref<1x128xf32, #tpu.memory_space<any>>
    %170 = tpu.memref_squeeze %169 : memref<1x128xf32, #tpu.memory_space<any>> -> memref<128xf32, #tpu.memory_space<any>>
    %c0_i32_100 = arith.constant 0 : i32
    %171 = tpu.memref_slice %arg8[%c5_i32, %c0_i32_100] : memref<8x128xf32, #tpu.memory_space<vmem>> -> memref<1x128xf32, #tpu.memory_space<vmem>>
    %172 = tpu.memref_squeeze %171 : memref<1x128xf32, #tpu.memory_space<vmem>> -> memref<128xf32, #tpu.memory_space<vmem>>
    %173 = tpu.memref_slice %arg11[%c0_i32_98] : memref<3x!tpu.dma_semaphore, #tpu.memory_space<semaphore_mem>> -> memref<1x!tpu.dma_semaphore, #tpu.memory_space<semaphore_mem>>
    %174 = tpu.memref_squeeze %173 : memref<1x!tpu.dma_semaphore, #tpu.memory_space<semaphore_mem>> -> memref<!tpu.dma_semaphore, #tpu.memory_space<semaphore_mem>>
    tpu.enqueue_dma source(%170 : memref<128xf32, #tpu.memory_space<any>>) target(%172 : memref<128xf32, #tpu.memory_space<vmem>>) target_semaphore(%174 : memref<!tpu.dma_semaphore, #tpu.memory_space<semaphore_mem>>)
    %c1_i32_101 = arith.constant 1 : i32
    %c0_i32_102 = arith.constant 0 : i32
    %175 = tpu.memref_slice %arg3[%165, %c0_i32_102] : memref<9x8xf32, #tpu.memory_space<any>> -> memref<1x8xf32, #tpu.memory_space<any>>
    %176 = tpu.memref_squeeze %175 : memref<1x8xf32, #tpu.memory_space<any>> -> memref<8xf32, #tpu.memory_space<any>>
    %c0_i32_103 = arith.constant 0 : i32
    %177 = tpu.memref_slice %arg9[%c5_i32, %c0_i32_103] : memref<8x8xf32, #tpu.memory_space<vmem>> -> memref<1x8xf32, #tpu.memory_space<vmem>>
    %178 = tpu.memref_squeeze %177 : memref<1x8xf32, #tpu.memory_space<vmem>> -> memref<8xf32, #tpu.memory_space<vmem>>
    %179 = tpu.memref_slice %arg11[%c1_i32_101] : memref<3x!tpu.dma_semaphore, #tpu.memory_space<semaphore_mem>> -> memref<1x!tpu.dma_semaphore, #tpu.memory_space<semaphore_mem>>
    %180 = tpu.memref_squeeze %179 : memref<1x!tpu.dma_semaphore, #tpu.memory_space<semaphore_mem>> -> memref<!tpu.dma_semaphore, #tpu.memory_space<semaphore_mem>>
    tpu.enqueue_dma source(%176 : memref<8xf32, #tpu.memory_space<any>>) target(%178 : memref<8xf32, #tpu.memory_space<vmem>>) target_semaphore(%180 : memref<!tpu.dma_semaphore, #tpu.memory_space<semaphore_mem>>)
    %c2_i32_104 = arith.constant 2 : i32
    %c0_i32_105 = arith.constant 0 : i32
    %181 = tpu.memref_slice %arg4[%168, %c0_i32_105] : memref<9x8xf32, #tpu.memory_space<any>> -> memref<1x8xf32, #tpu.memory_space<any>>
    %182 = tpu.memref_squeeze %181 : memref<1x8xf32, #tpu.memory_space<any>> -> memref<8xf32, #tpu.memory_space<any>>
    %c0_i32_106 = arith.constant 0 : i32
    %183 = tpu.memref_slice %arg10[%c5_i32, %c0_i32_106] : memref<8x8xf32, #tpu.memory_space<vmem>> -> memref<1x8xf32, #tpu.memory_space<vmem>>
    %184 = tpu.memref_squeeze %183 : memref<1x8xf32, #tpu.memory_space<vmem>> -> memref<8xf32, #tpu.memory_space<vmem>>
    %185 = tpu.memref_slice %arg11[%c2_i32_104] : memref<3x!tpu.dma_semaphore, #tpu.memory_space<semaphore_mem>> -> memref<1x!tpu.dma_semaphore, #tpu.memory_space<semaphore_mem>>
    %186 = tpu.memref_squeeze %185 : memref<1x!tpu.dma_semaphore, #tpu.memory_space<semaphore_mem>> -> memref<!tpu.dma_semaphore, #tpu.memory_space<semaphore_mem>>
    tpu.enqueue_dma source(%182 : memref<8xf32, #tpu.memory_space<any>>) target(%184 : memref<8xf32, #tpu.memory_space<vmem>>) target_semaphore(%186 : memref<!tpu.dma_semaphore, #tpu.memory_space<semaphore_mem>>)
    %c6_i32 = arith.constant 6 : i32
    %187 = arith.addi %0, %c6_i32 : i32
    %188 = arith.index_cast %187 : i32 to index
    %189 = memref.load %arg1[%188] : memref<16xi32, #tpu.memory_space<smem>>
    %c8_i32_107 = arith.constant 8 : i32
    %190 = arith.cmpi slt, %189, %c8_i32_107 : i32
    %c8_i32_108 = arith.constant 8 : i32
    %191 = arith.select %190, %189, %c8_i32_108 : i32
    %c8_i32_109 = arith.constant 8 : i32
    %192 = arith.cmpi sge, %189, %c8_i32_109 : i32
    %c16_i32_110 = arith.constant 16 : i32
    %193 = arith.cmpi slt, %189, %c16_i32_110 : i32
    %194 = arith.andi %192, %193 : i1
    %c8_i32_111 = arith.constant 8 : i32
    %195 = arith.subi %189, %c8_i32_111 : i32
    %c8_i32_112 = arith.constant 8 : i32
    %196 = arith.select %194, %195, %c8_i32_112 : i32
    %c16_i32_113 = arith.constant 16 : i32
    %197 = arith.cmpi sge, %189, %c16_i32_113 : i32
    %c16_i32_114 = arith.constant 16 : i32
    %198 = arith.subi %189, %c16_i32_114 : i32
    %c8_i32_115 = arith.constant 8 : i32
    %199 = arith.select %197, %198, %c8_i32_115 : i32
    %c0_i32_116 = arith.constant 0 : i32
    %c0_i32_117 = arith.constant 0 : i32
    %200 = tpu.memref_slice %arg2[%191, %c0_i32_117] : memref<9x128xf32, #tpu.memory_space<any>> -> memref<1x128xf32, #tpu.memory_space<any>>
    %201 = tpu.memref_squeeze %200 : memref<1x128xf32, #tpu.memory_space<any>> -> memref<128xf32, #tpu.memory_space<any>>
    %c0_i32_118 = arith.constant 0 : i32
    %202 = tpu.memref_slice %arg8[%c6_i32, %c0_i32_118] : memref<8x128xf32, #tpu.memory_space<vmem>> -> memref<1x128xf32, #tpu.memory_space<vmem>>
    %203 = tpu.memref_squeeze %202 : memref<1x128xf32, #tpu.memory_space<vmem>> -> memref<128xf32, #tpu.memory_space<vmem>>
    %204 = tpu.memref_slice %arg11[%c0_i32_116] : memref<3x!tpu.dma_semaphore, #tpu.memory_space<semaphore_mem>> -> memref<1x!tpu.dma_semaphore, #tpu.memory_space<semaphore_mem>>
    %205 = tpu.memref_squeeze %204 : memref<1x!tpu.dma_semaphore, #tpu.memory_space<semaphore_mem>> -> memref<!tpu.dma_semaphore, #tpu.memory_space<semaphore_mem>>
    tpu.enqueue_dma source(%201 : memref<128xf32, #tpu.memory_space<any>>) target(%203 : memref<128xf32, #tpu.memory_space<vmem>>) target_semaphore(%205 : memref<!tpu.dma_semaphore, #tpu.memory_space<semaphore_mem>>)
    %c1_i32_119 = arith.constant 1 : i32
    %c0_i32_120 = arith.constant 0 : i32
    %206 = tpu.memref_slice %arg3[%196, %c0_i32_120] : memref<9x8xf32, #tpu.memory_space<any>> -> memref<1x8xf32, #tpu.memory_space<any>>
    %207 = tpu.memref_squeeze %206 : memref<1x8xf32, #tpu.memory_space<any>> -> memref<8xf32, #tpu.memory_space<any>>
    %c0_i32_121 = arith.constant 0 : i32
    %208 = tpu.memref_slice %arg9[%c6_i32, %c0_i32_121] : memref<8x8xf32, #tpu.memory_space<vmem>> -> memref<1x8xf32, #tpu.memory_space<vmem>>
    %209 = tpu.memref_squeeze %208 : memref<1x8xf32, #tpu.memory_space<vmem>> -> memref<8xf32, #tpu.memory_space<vmem>>
    %210 = tpu.memref_slice %arg11[%c1_i32_119] : memref<3x!tpu.dma_semaphore, #tpu.memory_space<semaphore_mem>> -> memref<1x!tpu.dma_semaphore, #tpu.memory_space<semaphore_mem>>
    %211 = tpu.memref_squeeze %210 : memref<1x!tpu.dma_semaphore, #tpu.memory_space<semaphore_mem>> -> memref<!tpu.dma_semaphore, #tpu.memory_space<semaphore_mem>>
    tpu.enqueue_dma source(%207 : memref<8xf32, #tpu.memory_space<any>>) target(%209 : memref<8xf32, #tpu.memory_space<vmem>>) target_semaphore(%211 : memref<!tpu.dma_semaphore, #tpu.memory_space<semaphore_mem>>)
    %c2_i32_122 = arith.constant 2 : i32
    %c0_i32_123 = arith.constant 0 : i32
    %212 = tpu.memref_slice %arg4[%199, %c0_i32_123] : memref<9x8xf32, #tpu.memory_space<any>> -> memref<1x8xf32, #tpu.memory_space<any>>
    %213 = tpu.memref_squeeze %212 : memref<1x8xf32, #tpu.memory_space<any>> -> memref<8xf32, #tpu.memory_space<any>>
    %c0_i32_124 = arith.constant 0 : i32
    %214 = tpu.memref_slice %arg10[%c6_i32, %c0_i32_124] : memref<8x8xf32, #tpu.memory_space<vmem>> -> memref<1x8xf32, #tpu.memory_space<vmem>>
    %215 = tpu.memref_squeeze %214 : memref<1x8xf32, #tpu.memory_space<vmem>> -> memref<8xf32, #tpu.memory_space<vmem>>
    %216 = tpu.memref_slice %arg11[%c2_i32_122] : memref<3x!tpu.dma_semaphore, #tpu.memory_space<semaphore_mem>> -> memref<1x!tpu.dma_semaphore, #tpu.memory_space<semaphore_mem>>
    %217 = tpu.memref_squeeze %216 : memref<1x!tpu.dma_semaphore, #tpu.memory_space<semaphore_mem>> -> memref<!tpu.dma_semaphore, #tpu.memory_space<semaphore_mem>>
    tpu.enqueue_dma source(%213 : memref<8xf32, #tpu.memory_space<any>>) target(%215 : memref<8xf32, #tpu.memory_space<vmem>>) target_semaphore(%217 : memref<!tpu.dma_semaphore, #tpu.memory_space<semaphore_mem>>)
    %c7_i32 = arith.constant 7 : i32
    %218 = arith.addi %0, %c7_i32 : i32
    %219 = arith.index_cast %218 : i32 to index
    %220 = memref.load %arg1[%219] : memref<16xi32, #tpu.memory_space<smem>>
    %c8_i32_125 = arith.constant 8 : i32
    %221 = arith.cmpi slt, %220, %c8_i32_125 : i32
    %c8_i32_126 = arith.constant 8 : i32
    %222 = arith.select %221, %220, %c8_i32_126 : i32
    %c8_i32_127 = arith.constant 8 : i32
    %223 = arith.cmpi sge, %220, %c8_i32_127 : i32
    %c16_i32_128 = arith.constant 16 : i32
    %224 = arith.cmpi slt, %220, %c16_i32_128 : i32
    %225 = arith.andi %223, %224 : i1
    %c8_i32_129 = arith.constant 8 : i32
    %226 = arith.subi %220, %c8_i32_129 : i32
    %c8_i32_130 = arith.constant 8 : i32
    %227 = arith.select %225, %226, %c8_i32_130 : i32
    %c16_i32_131 = arith.constant 16 : i32
    %228 = arith.cmpi sge, %220, %c16_i32_131 : i32
    %c16_i32_132 = arith.constant 16 : i32
    %229 = arith.subi %220, %c16_i32_132 : i32
    %c8_i32_133 = arith.constant 8 : i32
    %230 = arith.select %228, %229, %c8_i32_133 : i32
    %c0_i32_134 = arith.constant 0 : i32
    %c0_i32_135 = arith.constant 0 : i32
    %231 = tpu.memref_slice %arg2[%222, %c0_i32_135] : memref<9x128xf32, #tpu.memory_space<any>> -> memref<1x128xf32, #tpu.memory_space<any>>
    %232 = tpu.memref_squeeze %231 : memref<1x128xf32, #tpu.memory_space<any>> -> memref<128xf32, #tpu.memory_space<any>>
    %c0_i32_136 = arith.constant 0 : i32
    %233 = tpu.memref_slice %arg8[%c7_i32, %c0_i32_136] : memref<8x128xf32, #tpu.memory_space<vmem>> -> memref<1x128xf32, #tpu.memory_space<vmem>>
    %234 = tpu.memref_squeeze %233 : memref<1x128xf32, #tpu.memory_space<vmem>> -> memref<128xf32, #tpu.memory_space<vmem>>
    %235 = tpu.memref_slice %arg11[%c0_i32_134] : memref<3x!tpu.dma_semaphore, #tpu.memory_space<semaphore_mem>> -> memref<1x!tpu.dma_semaphore, #tpu.memory_space<semaphore_mem>>
    %236 = tpu.memref_squeeze %235 : memref<1x!tpu.dma_semaphore, #tpu.memory_space<semaphore_mem>> -> memref<!tpu.dma_semaphore, #tpu.memory_space<semaphore_mem>>
    tpu.enqueue_dma source(%232 : memref<128xf32, #tpu.memory_space<any>>) target(%234 : memref<128xf32, #tpu.memory_space<vmem>>) target_semaphore(%236 : memref<!tpu.dma_semaphore, #tpu.memory_space<semaphore_mem>>)
    %c1_i32_137 = arith.constant 1 : i32
    %c0_i32_138 = arith.constant 0 : i32
    %237 = tpu.memref_slice %arg3[%227, %c0_i32_138] : memref<9x8xf32, #tpu.memory_space<any>> -> memref<1x8xf32, #tpu.memory_space<any>>
    %238 = tpu.memref_squeeze %237 : memref<1x8xf32, #tpu.memory_space<any>> -> memref<8xf32, #tpu.memory_space<any>>
    %c0_i32_139 = arith.constant 0 : i32
    %239 = tpu.memref_slice %arg9[%c7_i32, %c0_i32_139] : memref<8x8xf32, #tpu.memory_space<vmem>> -> memref<1x8xf32, #tpu.memory_space<vmem>>
    %240 = tpu.memref_squeeze %239 : memref<1x8xf32, #tpu.memory_space<vmem>> -> memref<8xf32, #tpu.memory_space<vmem>>
    %241 = tpu.memref_slice %arg11[%c1_i32_137] : memref<3x!tpu.dma_semaphore, #tpu.memory_space<semaphore_mem>> -> memref<1x!tpu.dma_semaphore, #tpu.memory_space<semaphore_mem>>
    %242 = tpu.memref_squeeze %241 : memref<1x!tpu.dma_semaphore, #tpu.memory_space<semaphore_mem>> -> memref<!tpu.dma_semaphore, #tpu.memory_space<semaphore_mem>>
    tpu.enqueue_dma source(%238 : memref<8xf32, #tpu.memory_space<any>>) target(%240 : memref<8xf32, #tpu.memory_space<vmem>>) target_semaphore(%242 : memref<!tpu.dma_semaphore, #tpu.memory_space<semaphore_mem>>)
    %c2_i32_140 = arith.constant 2 : i32
    %c0_i32_141 = arith.constant 0 : i32
    %243 = tpu.memref_slice %arg4[%230, %c0_i32_141] : memref<9x8xf32, #tpu.memory_space<any>> -> memref<1x8xf32, #tpu.memory_space<any>>
    %244 = tpu.memref_squeeze %243 : memref<1x8xf32, #tpu.memory_space<any>> -> memref<8xf32, #tpu.memory_space<any>>
    %c0_i32_142 = arith.constant 0 : i32
    %245 = tpu.memref_slice %arg10[%c7_i32, %c0_i32_142] : memref<8x8xf32, #tpu.memory_space<vmem>> -> memref<1x8xf32, #tpu.memory_space<vmem>>
    %246 = tpu.memref_squeeze %245 : memref<1x8xf32, #tpu.memory_space<vmem>> -> memref<8xf32, #tpu.memory_space<vmem>>
    %247 = tpu.memref_slice %arg11[%c2_i32_140] : memref<3x!tpu.dma_semaphore, #tpu.memory_space<semaphore_mem>> -> memref<1x!tpu.dma_semaphore, #tpu.memory_space<semaphore_mem>>
    %248 = tpu.memref_squeeze %247 : memref<1x!tpu.dma_semaphore, #tpu.memory_space<semaphore_mem>> -> memref<!tpu.dma_semaphore, #tpu.memory_space<semaphore_mem>>
    tpu.enqueue_dma source(%244 : memref<8xf32, #tpu.memory_space<any>>) target(%246 : memref<8xf32, #tpu.memory_space<vmem>>) target_semaphore(%248 : memref<!tpu.dma_semaphore, #tpu.memory_space<semaphore_mem>>)
    %c8_i32_143 = arith.constant 8 : i32
    %c0_i32_144 = arith.constant 0 : i32
    %c0_i32_145 = arith.constant 0 : i32
    %c0_i32_146 = arith.constant 0 : i32
    %c0_i32_147 = arith.constant 0 : i32
    %249 = tpu.memref_slice %arg2[%c0_i32_145, %c0_i32_147] : memref<9x128xf32, #tpu.memory_space<any>> -> memref<1x128xf32, #tpu.memory_space<any>>
    %250 = tpu.memref_squeeze %249 : memref<1x128xf32, #tpu.memory_space<any>> -> memref<128xf32, #tpu.memory_space<any>>
    %c0_i32_148 = arith.constant 0 : i32
    %251 = tpu.memref_slice %arg8[%c0_i32_144, %c0_i32_148] : memref<8x128xf32, #tpu.memory_space<vmem>> -> memref<1x128xf32, #tpu.memory_space<vmem>>
    %252 = tpu.memref_squeeze %251 : memref<1x128xf32, #tpu.memory_space<vmem>> -> memref<128xf32, #tpu.memory_space<vmem>>
    %253 = tpu.memref_slice %arg11[%c0_i32_146] : memref<3x!tpu.dma_semaphore, #tpu.memory_space<semaphore_mem>> -> memref<1x!tpu.dma_semaphore, #tpu.memory_space<semaphore_mem>>
    %254 = tpu.memref_squeeze %253 : memref<1x!tpu.dma_semaphore, #tpu.memory_space<semaphore_mem>> -> memref<!tpu.dma_semaphore, #tpu.memory_space<semaphore_mem>>
    tpu.wait_dma2 semaphore(%254 : memref<!tpu.dma_semaphore, #tpu.memory_space<semaphore_mem>>) src(%250 : memref<128xf32, #tpu.memory_space<any>>) dst(%252 : memref<128xf32, #tpu.memory_space<vmem>>)
    %c0_i32_149 = arith.constant 0 : i32
    %c1_i32_150 = arith.constant 1 : i32
    %c0_i32_151 = arith.constant 0 : i32
    %255 = tpu.memref_slice %arg3[%c0_i32_149, %c0_i32_151] : memref<9x8xf32, #tpu.memory_space<any>> -> memref<1x8xf32, #tpu.memory_space<any>>
    %256 = tpu.memref_squeeze %255 : memref<1x8xf32, #tpu.memory_space<any>> -> memref<8xf32, #tpu.memory_space<any>>
    %c0_i32_152 = arith.constant 0 : i32
    %257 = tpu.memref_slice %arg9[%c0_i32_144, %c0_i32_152] : memref<8x8xf32, #tpu.memory_space<vmem>> -> memref<1x8xf32, #tpu.memory_space<vmem>>
    %258 = tpu.memref_squeeze %257 : memref<1x8xf32, #tpu.memory_space<vmem>> -> memref<8xf32, #tpu.memory_space<vmem>>
    %259 = tpu.memref_slice %arg11[%c1_i32_150] : memref<3x!tpu.dma_semaphore, #tpu.memory_space<semaphore_mem>> -> memref<1x!tpu.dma_semaphore, #tpu.memory_space<semaphore_mem>>
    %260 = tpu.memref_squeeze %259 : memref<1x!tpu.dma_semaphore, #tpu.memory_space<semaphore_mem>> -> memref<!tpu.dma_semaphore, #tpu.memory_space<semaphore_mem>>
    tpu.wait_dma2 semaphore(%260 : memref<!tpu.dma_semaphore, #tpu.memory_space<semaphore_mem>>) src(%256 : memref<8xf32, #tpu.memory_space<any>>) dst(%258 : memref<8xf32, #tpu.memory_space<vmem>>)
    %c0_i32_153 = arith.constant 0 : i32
    %c2_i32_154 = arith.constant 2 : i32
    %c0_i32_155 = arith.constant 0 : i32
    %261 = tpu.memref_slice %arg4[%c0_i32_153, %c0_i32_155] : memref<9x8xf32, #tpu.memory_space<any>> -> memref<1x8xf32, #tpu.memory_space<any>>
    %262 = tpu.memref_squeeze %261 : memref<1x8xf32, #tpu.memory_space<any>> -> memref<8xf32, #tpu.memory_space<any>>
    %c0_i32_156 = arith.constant 0 : i32
    %263 = tpu.memref_slice %arg10[%c0_i32_144, %c0_i32_156] : memref<8x8xf32, #tpu.memory_space<vmem>> -> memref<1x8xf32, #tpu.memory_space<vmem>>
    %264 = tpu.memref_squeeze %263 : memref<1x8xf32, #tpu.memory_space<vmem>> -> memref<8xf32, #tpu.memory_space<vmem>>
    %265 = tpu.memref_slice %arg11[%c2_i32_154] : memref<3x!tpu.dma_semaphore, #tpu.memory_space<semaphore_mem>> -> memref<1x!tpu.dma_semaphore, #tpu.memory_space<semaphore_mem>>
    %266 = tpu.memref_squeeze %265 : memref<1x!tpu.dma_semaphore, #tpu.memory_space<semaphore_mem>> -> memref<!tpu.dma_semaphore, #tpu.memory_space<semaphore_mem>>
    tpu.wait_dma2 semaphore(%266 : memref<!tpu.dma_semaphore, #tpu.memory_space<semaphore_mem>>) src(%262 : memref<8xf32, #tpu.memory_space<any>>) dst(%264 : memref<8xf32, #tpu.memory_space<vmem>>)
    %c1_i32_157 = arith.constant 1 : i32
    %c0_i32_158 = arith.constant 0 : i32
    %c0_i32_159 = arith.constant 0 : i32
    %c0_i32_160 = arith.constant 0 : i32
    %267 = tpu.memref_slice %arg2[%c0_i32_158, %c0_i32_160] : memref<9x128xf32, #tpu.memory_space<any>> -> memref<1x128xf32, #tpu.memory_space<any>>
    %268 = tpu.memref_squeeze %267 : memref<1x128xf32, #tpu.memory_space<any>> -> memref<128xf32, #tpu.memory_space<any>>
    %c0_i32_161 = arith.constant 0 : i32
    %269 = tpu.memref_slice %arg8[%c1_i32_157, %c0_i32_161] : memref<8x128xf32, #tpu.memory_space<vmem>> -> memref<1x128xf32, #tpu.memory_space<vmem>>
    %270 = tpu.memref_squeeze %269 : memref<1x128xf32, #tpu.memory_space<vmem>> -> memref<128xf32, #tpu.memory_space<vmem>>
    %271 = tpu.memref_slice %arg11[%c0_i32_159] : memref<3x!tpu.dma_semaphore, #tpu.memory_space<semaphore_mem>> -> memref<1x!tpu.dma_semaphore, #tpu.memory_space<semaphore_mem>>
    %272 = tpu.memref_squeeze %271 : memref<1x!tpu.dma_semaphore, #tpu.memory_space<semaphore_mem>> -> memref<!tpu.dma_semaphore, #tpu.memory_space<semaphore_mem>>
    tpu.wait_dma2 semaphore(%272 : memref<!tpu.dma_semaphore, #tpu.memory_space<semaphore_mem>>) src(%268 : memref<128xf32, #tpu.memory_space<any>>) dst(%270 : memref<128xf32, #tpu.memory_space<vmem>>)
    %c0_i32_162 = arith.constant 0 : i32
    %c1_i32_163 = arith.constant 1 : i32
    %c0_i32_164 = arith.constant 0 : i32
    %273 = tpu.memref_slice %arg3[%c0_i32_162, %c0_i32_164] : memref<9x8xf32, #tpu.memory_space<any>> -> memref<1x8xf32, #tpu.memory_space<any>>
    %274 = tpu.memref_squeeze %273 : memref<1x8xf32, #tpu.memory_space<any>> -> memref<8xf32, #tpu.memory_space<any>>
    %c0_i32_165 = arith.constant 0 : i32
    %275 = tpu.memref_slice %arg9[%c1_i32_157, %c0_i32_165] : memref<8x8xf32, #tpu.memory_space<vmem>> -> memref<1x8xf32, #tpu.memory_space<vmem>>
    %276 = tpu.memref_squeeze %275 : memref<1x8xf32, #tpu.memory_space<vmem>> -> memref<8xf32, #tpu.memory_space<vmem>>
    %277 = tpu.memref_slice %arg11[%c1_i32_163] : memref<3x!tpu.dma_semaphore, #tpu.memory_space<semaphore_mem>> -> memref<1x!tpu.dma_semaphore, #tpu.memory_space<semaphore_mem>>
    %278 = tpu.memref_squeeze %277 : memref<1x!tpu.dma_semaphore, #tpu.memory_space<semaphore_mem>> -> memref<!tpu.dma_semaphore, #tpu.memory_space<semaphore_mem>>
    tpu.wait_dma2 semaphore(%278 : memref<!tpu.dma_semaphore, #tpu.memory_space<semaphore_mem>>) src(%274 : memref<8xf32, #tpu.memory_space<any>>) dst(%276 : memref<8xf32, #tpu.memory_space<vmem>>)
    %c0_i32_166 = arith.constant 0 : i32
    %c2_i32_167 = arith.constant 2 : i32
    %c0_i32_168 = arith.constant 0 : i32
    %279 = tpu.memref_slice %arg4[%c0_i32_166, %c0_i32_168] : memref<9x8xf32, #tpu.memory_space<any>> -> memref<1x8xf32, #tpu.memory_space<any>>
    %280 = tpu.memref_squeeze %279 : memref<1x8xf32, #tpu.memory_space<any>> -> memref<8xf32, #tpu.memory_space<any>>
    %c0_i32_169 = arith.constant 0 : i32
    %281 = tpu.memref_slice %arg10[%c1_i32_157, %c0_i32_169] : memref<8x8xf32, #tpu.memory_space<vmem>> -> memref<1x8xf32, #tpu.memory_space<vmem>>
    %282 = tpu.memref_squeeze %281 : memref<1x8xf32, #tpu.memory_space<vmem>> -> memref<8xf32, #tpu.memory_space<vmem>>
    %283 = tpu.memref_slice %arg11[%c2_i32_167] : memref<3x!tpu.dma_semaphore, #tpu.memory_space<semaphore_mem>> -> memref<1x!tpu.dma_semaphore, #tpu.memory_space<semaphore_mem>>
    %284 = tpu.memref_squeeze %283 : memref<1x!tpu.dma_semaphore, #tpu.memory_space<semaphore_mem>> -> memref<!tpu.dma_semaphore, #tpu.memory_space<semaphore_mem>>
    tpu.wait_dma2 semaphore(%284 : memref<!tpu.dma_semaphore, #tpu.memory_space<semaphore_mem>>) src(%280 : memref<8xf32, #tpu.memory_space<any>>) dst(%282 : memref<8xf32, #tpu.memory_space<vmem>>)
    %c2_i32_170 = arith.constant 2 : i32
    %c0_i32_171 = arith.constant 0 : i32
    %c0_i32_172 = arith.constant 0 : i32
    %c0_i32_173 = arith.constant 0 : i32
    %285 = tpu.memref_slice %arg2[%c0_i32_171, %c0_i32_173] : memref<9x128xf32, #tpu.memory_space<any>> -> memref<1x128xf32, #tpu.memory_space<any>>
    %286 = tpu.memref_squeeze %285 : memref<1x128xf32, #tpu.memory_space<any>> -> memref<128xf32, #tpu.memory_space<any>>
    %c0_i32_174 = arith.constant 0 : i32
    %287 = tpu.memref_slice %arg8[%c2_i32_170, %c0_i32_174] : memref<8x128xf32, #tpu.memory_space<vmem>> -> memref<1x128xf32, #tpu.memory_space<vmem>>
    %288 = tpu.memref_squeeze %287 : memref<1x128xf32, #tpu.memory_space<vmem>> -> memref<128xf32, #tpu.memory_space<vmem>>
    %289 = tpu.memref_slice %arg11[%c0_i32_172] : memref<3x!tpu.dma_semaphore, #tpu.memory_space<semaphore_mem>> -> memref<1x!tpu.dma_semaphore, #tpu.memory_space<semaphore_mem>>
    %290 = tpu.memref_squeeze %289 : memref<1x!tpu.dma_semaphore, #tpu.memory_space<semaphore_mem>> -> memref<!tpu.dma_semaphore, #tpu.memory_space<semaphore_mem>>
    tpu.wait_dma2 semaphore(%290 : memref<!tpu.dma_semaphore, #tpu.memory_space<semaphore_mem>>) src(%286 : memref<128xf32, #tpu.memory_space<any>>) dst(%288 : memref<128xf32, #tpu.memory_space<vmem>>)
    %c0_i32_175 = arith.constant 0 : i32
    %c1_i32_176 = arith.constant 1 : i32
    %c0_i32_177 = arith.constant 0 : i32
    %291 = tpu.memref_slice %arg3[%c0_i32_175, %c0_i32_177] : memref<9x8xf32, #tpu.memory_space<any>> -> memref<1x8xf32, #tpu.memory_space<any>>
    %292 = tpu.memref_squeeze %291 : memref<1x8xf32, #tpu.memory_space<any>> -> memref<8xf32, #tpu.memory_space<any>>
    %c0_i32_178 = arith.constant 0 : i32
    %293 = tpu.memref_slice %arg9[%c2_i32_170, %c0_i32_178] : memref<8x8xf32, #tpu.memory_space<vmem>> -> memref<1x8xf32, #tpu.memory_space<vmem>>
    %294 = tpu.memref_squeeze %293 : memref<1x8xf32, #tpu.memory_space<vmem>> -> memref<8xf32, #tpu.memory_space<vmem>>
    %295 = tpu.memref_slice %arg11[%c1_i32_176] : memref<3x!tpu.dma_semaphore, #tpu.memory_space<semaphore_mem>> -> memref<1x!tpu.dma_semaphore, #tpu.memory_space<semaphore_mem>>
    %296 = tpu.memref_squeeze %295 : memref<1x!tpu.dma_semaphore, #tpu.memory_space<semaphore_mem>> -> memref<!tpu.dma_semaphore, #tpu.memory_space<semaphore_mem>>
    tpu.wait_dma2 semaphore(%296 : memref<!tpu.dma_semaphore, #tpu.memory_space<semaphore_mem>>) src(%292 : memref<8xf32, #tpu.memory_space<any>>) dst(%294 : memref<8xf32, #tpu.memory_space<vmem>>)
    %c0_i32_179 = arith.constant 0 : i32
    %c2_i32_180 = arith.constant 2 : i32
    %c0_i32_181 = arith.constant 0 : i32
    %297 = tpu.memref_slice %arg4[%c0_i32_179, %c0_i32_181] : memref<9x8xf32, #tpu.memory_space<any>> -> memref<1x8xf32, #tpu.memory_space<any>>
    %298 = tpu.memref_squeeze %297 : memref<1x8xf32, #tpu.memory_space<any>> -> memref<8xf32, #tpu.memory_space<any>>
    %c0_i32_182 = arith.constant 0 : i32
    %299 = tpu.memref_slice %arg10[%c2_i32_170, %c0_i32_182] : memref<8x8xf32, #tpu.memory_space<vmem>> -> memref<1x8xf32, #tpu.memory_space<vmem>>
    %300 = tpu.memref_squeeze %299 : memref<1x8xf32, #tpu.memory_space<vmem>> -> memref<8xf32, #tpu.memory_space<vmem>>
    %301 = tpu.memref_slice %arg11[%c2_i32_180] : memref<3x!tpu.dma_semaphore, #tpu.memory_space<semaphore_mem>> -> memref<1x!tpu.dma_semaphore, #tpu.memory_space<semaphore_mem>>
    %302 = tpu.memref_squeeze %301 : memref<1x!tpu.dma_semaphore, #tpu.memory_space<semaphore_mem>> -> memref<!tpu.dma_semaphore, #tpu.memory_space<semaphore_mem>>
    tpu.wait_dma2 semaphore(%302 : memref<!tpu.dma_semaphore, #tpu.memory_space<semaphore_mem>>) src(%298 : memref<8xf32, #tpu.memory_space<any>>) dst(%300 : memref<8xf32, #tpu.memory_space<vmem>>)
    %c3_i32_183 = arith.constant 3 : i32
    %c0_i32_184 = arith.constant 0 : i32
    %c0_i32_185 = arith.constant 0 : i32
    %c0_i32_186 = arith.constant 0 : i32
    %303 = tpu.memref_slice %arg2[%c0_i32_184, %c0_i32_186] : memref<9x128xf32, #tpu.memory_space<any>> -> memref<1x128xf32, #tpu.memory_space<any>>
    %304 = tpu.memref_squeeze %303 : memref<1x128xf32, #tpu.memory_space<any>> -> memref<128xf32, #tpu.memory_space<any>>
    %c0_i32_187 = arith.constant 0 : i32
    %305 = tpu.memref_slice %arg8[%c3_i32_183, %c0_i32_187] : memref<8x128xf32, #tpu.memory_space<vmem>> -> memref<1x128xf32, #tpu.memory_space<vmem>>
    %306 = tpu.memref_squeeze %305 : memref<1x128xf32, #tpu.memory_space<vmem>> -> memref<128xf32, #tpu.memory_space<vmem>>
    %307 = tpu.memref_slice %arg11[%c0_i32_185] : memref<3x!tpu.dma_semaphore, #tpu.memory_space<semaphore_mem>> -> memref<1x!tpu.dma_semaphore, #tpu.memory_space<semaphore_mem>>
    %308 = tpu.memref_squeeze %307 : memref<1x!tpu.dma_semaphore, #tpu.memory_space<semaphore_mem>> -> memref<!tpu.dma_semaphore, #tpu.memory_space<semaphore_mem>>
    tpu.wait_dma2 semaphore(%308 : memref<!tpu.dma_semaphore, #tpu.memory_space<semaphore_mem>>) src(%304 : memref<128xf32, #tpu.memory_space<any>>) dst(%306 : memref<128xf32, #tpu.memory_space<vmem>>)
    %c0_i32_188 = arith.constant 0 : i32
    %c1_i32_189 = arith.constant 1 : i32
    %c0_i32_190 = arith.constant 0 : i32
    %309 = tpu.memref_slice %arg3[%c0_i32_188, %c0_i32_190] : memref<9x8xf32, #tpu.memory_space<any>> -> memref<1x8xf32, #tpu.memory_space<any>>
    %310 = tpu.memref_squeeze %309 : memref<1x8xf32, #tpu.memory_space<any>> -> memref<8xf32, #tpu.memory_space<any>>
    %c0_i32_191 = arith.constant 0 : i32
    %311 = tpu.memref_slice %arg9[%c3_i32_183, %c0_i32_191] : memref<8x8xf32, #tpu.memory_space<vmem>> -> memref<1x8xf32, #tpu.memory_space<vmem>>
    %312 = tpu.memref_squeeze %311 : memref<1x8xf32, #tpu.memory_space<vmem>> -> memref<8xf32, #tpu.memory_space<vmem>>
    %313 = tpu.memref_slice %arg11[%c1_i32_189] : memref<3x!tpu.dma_semaphore, #tpu.memory_space<semaphore_mem>> -> memref<1x!tpu.dma_semaphore, #tpu.memory_space<semaphore_mem>>
    %314 = tpu.memref_squeeze %313 : memref<1x!tpu.dma_semaphore, #tpu.memory_space<semaphore_mem>> -> memref<!tpu.dma_semaphore, #tpu.memory_space<semaphore_mem>>
    tpu.wait_dma2 semaphore(%314 : memref<!tpu.dma_semaphore, #tpu.memory_space<semaphore_mem>>) src(%310 : memref<8xf32, #tpu.memory_space<any>>) dst(%312 : memref<8xf32, #tpu.memory_space<vmem>>)
    %c0_i32_192 = arith.constant 0 : i32
    %c2_i32_193 = arith.constant 2 : i32
    %c0_i32_194 = arith.constant 0 : i32
    %315 = tpu.memref_slice %arg4[%c0_i32_192, %c0_i32_194] : memref<9x8xf32, #tpu.memory_space<any>> -> memref<1x8xf32, #tpu.memory_space<any>>
    %316 = tpu.memref_squeeze %315 : memref<1x8xf32, #tpu.memory_space<any>> -> memref<8xf32, #tpu.memory_space<any>>
    %c0_i32_195 = arith.constant 0 : i32
    %317 = tpu.memref_slice %arg10[%c3_i32_183, %c0_i32_195] : memref<8x8xf32, #tpu.memory_space<vmem>> -> memref<1x8xf32, #tpu.memory_space<vmem>>
    %318 = tpu.memref_squeeze %317 : memref<1x8xf32, #tpu.memory_space<vmem>> -> memref<8xf32, #tpu.memory_space<vmem>>
    %319 = tpu.memref_slice %arg11[%c2_i32_193] : memref<3x!tpu.dma_semaphore, #tpu.memory_space<semaphore_mem>> -> memref<1x!tpu.dma_semaphore, #tpu.memory_space<semaphore_mem>>
    %320 = tpu.memref_squeeze %319 : memref<1x!tpu.dma_semaphore, #tpu.memory_space<semaphore_mem>> -> memref<!tpu.dma_semaphore, #tpu.memory_space<semaphore_mem>>
    tpu.wait_dma2 semaphore(%320 : memref<!tpu.dma_semaphore, #tpu.memory_space<semaphore_mem>>) src(%316 : memref<8xf32, #tpu.memory_space<any>>) dst(%318 : memref<8xf32, #tpu.memory_space<vmem>>)
    %c4_i32_196 = arith.constant 4 : i32
    %c0_i32_197 = arith.constant 0 : i32
    %c0_i32_198 = arith.constant 0 : i32
    %c0_i32_199 = arith.constant 0 : i32
    %321 = tpu.memref_slice %arg2[%c0_i32_197, %c0_i32_199] : memref<9x128xf32, #tpu.memory_space<any>> -> memref<1x128xf32, #tpu.memory_space<any>>
    %322 = tpu.memref_squeeze %321 : memref<1x128xf32, #tpu.memory_space<any>> -> memref<128xf32, #tpu.memory_space<any>>
    %c0_i32_200 = arith.constant 0 : i32
    %323 = tpu.memref_slice %arg8[%c4_i32_196, %c0_i32_200] : memref<8x128xf32, #tpu.memory_space<vmem>> -> memref<1x128xf32, #tpu.memory_space<vmem>>
    %324 = tpu.memref_squeeze %323 : memref<1x128xf32, #tpu.memory_space<vmem>> -> memref<128xf32, #tpu.memory_space<vmem>>
    %325 = tpu.memref_slice %arg11[%c0_i32_198] : memref<3x!tpu.dma_semaphore, #tpu.memory_space<semaphore_mem>> -> memref<1x!tpu.dma_semaphore, #tpu.memory_space<semaphore_mem>>
    %326 = tpu.memref_squeeze %325 : memref<1x!tpu.dma_semaphore, #tpu.memory_space<semaphore_mem>> -> memref<!tpu.dma_semaphore, #tpu.memory_space<semaphore_mem>>
    tpu.wait_dma2 semaphore(%326 : memref<!tpu.dma_semaphore, #tpu.memory_space<semaphore_mem>>) src(%322 : memref<128xf32, #tpu.memory_space<any>>) dst(%324 : memref<128xf32, #tpu.memory_space<vmem>>)
    %c0_i32_201 = arith.constant 0 : i32
    %c1_i32_202 = arith.constant 1 : i32
    %c0_i32_203 = arith.constant 0 : i32
    %327 = tpu.memref_slice %arg3[%c0_i32_201, %c0_i32_203] : memref<9x8xf32, #tpu.memory_space<any>> -> memref<1x8xf32, #tpu.memory_space<any>>
    %328 = tpu.memref_squeeze %327 : memref<1x8xf32, #tpu.memory_space<any>> -> memref<8xf32, #tpu.memory_space<any>>
    %c0_i32_204 = arith.constant 0 : i32
    %329 = tpu.memref_slice %arg9[%c4_i32_196, %c0_i32_204] : memref<8x8xf32, #tpu.memory_space<vmem>> -> memref<1x8xf32, #tpu.memory_space<vmem>>
    %330 = tpu.memref_squeeze %329 : memref<1x8xf32, #tpu.memory_space<vmem>> -> memref<8xf32, #tpu.memory_space<vmem>>
    %331 = tpu.memref_slice %arg11[%c1_i32_202] : memref<3x!tpu.dma_semaphore, #tpu.memory_space<semaphore_mem>> -> memref<1x!tpu.dma_semaphore, #tpu.memory_space<semaphore_mem>>
    %332 = tpu.memref_squeeze %331 : memref<1x!tpu.dma_semaphore, #tpu.memory_space<semaphore_mem>> -> memref<!tpu.dma_semaphore, #tpu.memory_space<semaphore_mem>>
    tpu.wait_dma2 semaphore(%332 : memref<!tpu.dma_semaphore, #tpu.memory_space<semaphore_mem>>) src(%328 : memref<8xf32, #tpu.memory_space<any>>) dst(%330 : memref<8xf32, #tpu.memory_space<vmem>>)
    %c0_i32_205 = arith.constant 0 : i32
    %c2_i32_206 = arith.constant 2 : i32
    %c0_i32_207 = arith.constant 0 : i32
    %333 = tpu.memref_slice %arg4[%c0_i32_205, %c0_i32_207] : memref<9x8xf32, #tpu.memory_space<any>> -> memref<1x8xf32, #tpu.memory_space<any>>
    %334 = tpu.memref_squeeze %333 : memref<1x8xf32, #tpu.memory_space<any>> -> memref<8xf32, #tpu.memory_space<any>>
    %c0_i32_208 = arith.constant 0 : i32
    %335 = tpu.memref_slice %arg10[%c4_i32_196, %c0_i32_208] : memref<8x8xf32, #tpu.memory_space<vmem>> -> memref<1x8xf32, #tpu.memory_space<vmem>>
    %336 = tpu.memref_squeeze %335 : memref<1x8xf32, #tpu.memory_space<vmem>> -> memref<8xf32, #tpu.memory_space<vmem>>
    %337 = tpu.memref_slice %arg11[%c2_i32_206] : memref<3x!tpu.dma_semaphore, #tpu.memory_space<semaphore_mem>> -> memref<1x!tpu.dma_semaphore, #tpu.memory_space<semaphore_mem>>
    %338 = tpu.memref_squeeze %337 : memref<1x!tpu.dma_semaphore, #tpu.memory_space<semaphore_mem>> -> memref<!tpu.dma_semaphore, #tpu.memory_space<semaphore_mem>>
    tpu.wait_dma2 semaphore(%338 : memref<!tpu.dma_semaphore, #tpu.memory_space<semaphore_mem>>) src(%334 : memref<8xf32, #tpu.memory_space<any>>) dst(%336 : memref<8xf32, #tpu.memory_space<vmem>>)
    %c5_i32_209 = arith.constant 5 : i32
    %c0_i32_210 = arith.constant 0 : i32
    %c0_i32_211 = arith.constant 0 : i32
    %c0_i32_212 = arith.constant 0 : i32
    %339 = tpu.memref_slice %arg2[%c0_i32_210, %c0_i32_212] : memref<9x128xf32, #tpu.memory_space<any>> -> memref<1x128xf32, #tpu.memory_space<any>>
    %340 = tpu.memref_squeeze %339 : memref<1x128xf32, #tpu.memory_space<any>> -> memref<128xf32, #tpu.memory_space<any>>
    %c0_i32_213 = arith.constant 0 : i32
    %341 = tpu.memref_slice %arg8[%c5_i32_209, %c0_i32_213] : memref<8x128xf32, #tpu.memory_space<vmem>> -> memref<1x128xf32, #tpu.memory_space<vmem>>
    %342 = tpu.memref_squeeze %341 : memref<1x128xf32, #tpu.memory_space<vmem>> -> memref<128xf32, #tpu.memory_space<vmem>>
    %343 = tpu.memref_slice %arg11[%c0_i32_211] : memref<3x!tpu.dma_semaphore, #tpu.memory_space<semaphore_mem>> -> memref<1x!tpu.dma_semaphore, #tpu.memory_space<semaphore_mem>>
    %344 = tpu.memref_squeeze %343 : memref<1x!tpu.dma_semaphore, #tpu.memory_space<semaphore_mem>> -> memref<!tpu.dma_semaphore, #tpu.memory_space<semaphore_mem>>
    tpu.wait_dma2 semaphore(%344 : memref<!tpu.dma_semaphore, #tpu.memory_space<semaphore_mem>>) src(%340 : memref<128xf32, #tpu.memory_space<any>>) dst(%342 : memref<128xf32, #tpu.memory_space<vmem>>)
    %c0_i32_214 = arith.constant 0 : i32
    %c1_i32_215 = arith.constant 1 : i32
    %c0_i32_216 = arith.constant 0 : i32
    %345 = tpu.memref_slice %arg3[%c0_i32_214, %c0_i32_216] : memref<9x8xf32, #tpu.memory_space<any>> -> memref<1x8xf32, #tpu.memory_space<any>>
    %346 = tpu.memref_squeeze %345 : memref<1x8xf32, #tpu.memory_space<any>> -> memref<8xf32, #tpu.memory_space<any>>
    %c0_i32_217 = arith.constant 0 : i32
    %347 = tpu.memref_slice %arg9[%c5_i32_209, %c0_i32_217] : memref<8x8xf32, #tpu.memory_space<vmem>> -> memref<1x8xf32, #tpu.memory_space<vmem>>
    %348 = tpu.memref_squeeze %347 : memref<1x8xf32, #tpu.memory_space<vmem>> -> memref<8xf32, #tpu.memory_space<vmem>>
    %349 = tpu.memref_slice %arg11[%c1_i32_215] : memref<3x!tpu.dma_semaphore, #tpu.memory_space<semaphore_mem>> -> memref<1x!tpu.dma_semaphore, #tpu.memory_space<semaphore_mem>>
    %350 = tpu.memref_squeeze %349 : memref<1x!tpu.dma_semaphore, #tpu.memory_space<semaphore_mem>> -> memref<!tpu.dma_semaphore, #tpu.memory_space<semaphore_mem>>
    tpu.wait_dma2 semaphore(%350 : memref<!tpu.dma_semaphore, #tpu.memory_space<semaphore_mem>>) src(%346 : memref<8xf32, #tpu.memory_space<any>>) dst(%348 : memref<8xf32, #tpu.memory_space<vmem>>)
    %c0_i32_218 = arith.constant 0 : i32
    %c2_i32_219 = arith.constant 2 : i32
    %c0_i32_220 = arith.constant 0 : i32
    %351 = tpu.memref_slice %arg4[%c0_i32_218, %c0_i32_220] : memref<9x8xf32, #tpu.memory_space<any>> -> memref<1x8xf32, #tpu.memory_space<any>>
    %352 = tpu.memref_squeeze %351 : memref<1x8xf32, #tpu.memory_space<any>> -> memref<8xf32, #tpu.memory_space<any>>
    %c0_i32_221 = arith.constant 0 : i32
    %353 = tpu.memref_slice %arg10[%c5_i32_209, %c0_i32_221] : memref<8x8xf32, #tpu.memory_space<vmem>> -> memref<1x8xf32, #tpu.memory_space<vmem>>
    %354 = tpu.memref_squeeze %353 : memref<1x8xf32, #tpu.memory_space<vmem>> -> memref<8xf32, #tpu.memory_space<vmem>>
    %355 = tpu.memref_slice %arg11[%c2_i32_219] : memref<3x!tpu.dma_semaphore, #tpu.memory_space<semaphore_mem>> -> memref<1x!tpu.dma_semaphore, #tpu.memory_space<semaphore_mem>>
    %356 = tpu.memref_squeeze %355 : memref<1x!tpu.dma_semaphore, #tpu.memory_space<semaphore_mem>> -> memref<!tpu.dma_semaphore, #tpu.memory_space<semaphore_mem>>
    tpu.wait_dma2 semaphore(%356 : memref<!tpu.dma_semaphore, #tpu.memory_space<semaphore_mem>>) src(%352 : memref<8xf32, #tpu.memory_space<any>>) dst(%354 : memref<8xf32, #tpu.memory_space<vmem>>)
    %c6_i32_222 = arith.constant 6 : i32
    %c0_i32_223 = arith.constant 0 : i32
    %c0_i32_224 = arith.constant 0 : i32
    %c0_i32_225 = arith.constant 0 : i32
    %357 = tpu.memref_slice %arg2[%c0_i32_223, %c0_i32_225] : memref<9x128xf32, #tpu.memory_space<any>> -> memref<1x128xf32, #tpu.memory_space<any>>
    %358 = tpu.memref_squeeze %357 : memref<1x128xf32, #tpu.memory_space<any>> -> memref<128xf32, #tpu.memory_space<any>>
    %c0_i32_226 = arith.constant 0 : i32
    %359 = tpu.memref_slice %arg8[%c6_i32_222, %c0_i32_226] : memref<8x128xf32, #tpu.memory_space<vmem>> -> memref<1x128xf32, #tpu.memory_space<vmem>>
    %360 = tpu.memref_squeeze %359 : memref<1x128xf32, #tpu.memory_space<vmem>> -> memref<128xf32, #tpu.memory_space<vmem>>
    %361 = tpu.memref_slice %arg11[%c0_i32_224] : memref<3x!tpu.dma_semaphore, #tpu.memory_space<semaphore_mem>> -> memref<1x!tpu.dma_semaphore, #tpu.memory_space<semaphore_mem>>
    %362 = tpu.memref_squeeze %361 : memref<1x!tpu.dma_semaphore, #tpu.memory_space<semaphore_mem>> -> memref<!tpu.dma_semaphore, #tpu.memory_space<semaphore_mem>>
    tpu.wait_dma2 semaphore(%362 : memref<!tpu.dma_semaphore, #tpu.memory_space<semaphore_mem>>) src(%358 : memref<128xf32, #tpu.memory_space<any>>) dst(%360 : memref<128xf32, #tpu.memory_space<vmem>>)
    %c0_i32_227 = arith.constant 0 : i32
    %c1_i32_228 = arith.constant 1 : i32
    %c0_i32_229 = arith.constant 0 : i32
    %363 = tpu.memref_slice %arg3[%c0_i32_227, %c0_i32_229] : memref<9x8xf32, #tpu.memory_space<any>> -> memref<1x8xf32, #tpu.memory_space<any>>
    %364 = tpu.memref_squeeze %363 : memref<1x8xf32, #tpu.memory_space<any>> -> memref<8xf32, #tpu.memory_space<any>>
    %c0_i32_230 = arith.constant 0 : i32
    %365 = tpu.memref_slice %arg9[%c6_i32_222, %c0_i32_230] : memref<8x8xf32, #tpu.memory_space<vmem>> -> memref<1x8xf32, #tpu.memory_space<vmem>>
    %366 = tpu.memref_squeeze %365 : memref<1x8xf32, #tpu.memory_space<vmem>> -> memref<8xf32, #tpu.memory_space<vmem>>
    %367 = tpu.memref_slice %arg11[%c1_i32_228] : memref<3x!tpu.dma_semaphore, #tpu.memory_space<semaphore_mem>> -> memref<1x!tpu.dma_semaphore, #tpu.memory_space<semaphore_mem>>
    %368 = tpu.memref_squeeze %367 : memref<1x!tpu.dma_semaphore, #tpu.memory_space<semaphore_mem>> -> memref<!tpu.dma_semaphore, #tpu.memory_space<semaphore_mem>>
    tpu.wait_dma2 semaphore(%368 : memref<!tpu.dma_semaphore, #tpu.memory_space<semaphore_mem>>) src(%364 : memref<8xf32, #tpu.memory_space<any>>) dst(%366 : memref<8xf32, #tpu.memory_space<vmem>>)
    %c0_i32_231 = arith.constant 0 : i32
    %c2_i32_232 = arith.constant 2 : i32
    %c0_i32_233 = arith.constant 0 : i32
    %369 = tpu.memref_slice %arg4[%c0_i32_231, %c0_i32_233] : memref<9x8xf32, #tpu.memory_space<any>> -> memref<1x8xf32, #tpu.memory_space<any>>
    %370 = tpu.memref_squeeze %369 : memref<1x8xf32, #tpu.memory_space<any>> -> memref<8xf32, #tpu.memory_space<any>>
    %c0_i32_234 = arith.constant 0 : i32
    %371 = tpu.memref_slice %arg10[%c6_i32_222, %c0_i32_234] : memref<8x8xf32, #tpu.memory_space<vmem>> -> memref<1x8xf32, #tpu.memory_space<vmem>>
    %372 = tpu.memref_squeeze %371 : memref<1x8xf32, #tpu.memory_space<vmem>> -> memref<8xf32, #tpu.memory_space<vmem>>
    %373 = tpu.memref_slice %arg11[%c2_i32_232] : memref<3x!tpu.dma_semaphore, #tpu.memory_space<semaphore_mem>> -> memref<1x!tpu.dma_semaphore, #tpu.memory_space<semaphore_mem>>
    %374 = tpu.memref_squeeze %373 : memref<1x!tpu.dma_semaphore, #tpu.memory_space<semaphore_mem>> -> memref<!tpu.dma_semaphore, #tpu.memory_space<semaphore_mem>>
    tpu.wait_dma2 semaphore(%374 : memref<!tpu.dma_semaphore, #tpu.memory_space<semaphore_mem>>) src(%370 : memref<8xf32, #tpu.memory_space<any>>) dst(%372 : memref<8xf32, #tpu.memory_space<vmem>>)
    %c7_i32_235 = arith.constant 7 : i32
    %c0_i32_236 = arith.constant 0 : i32
    %c0_i32_237 = arith.constant 0 : i32
    %c0_i32_238 = arith.constant 0 : i32
    %375 = tpu.memref_slice %arg2[%c0_i32_236, %c0_i32_238] : memref<9x128xf32, #tpu.memory_space<any>> -> memref<1x128xf32, #tpu.memory_space<any>>
    %376 = tpu.memref_squeeze %375 : memref<1x128xf32, #tpu.memory_space<any>> -> memref<128xf32, #tpu.memory_space<any>>
    %c0_i32_239 = arith.constant 0 : i32
    %377 = tpu.memref_slice %arg8[%c7_i32_235, %c0_i32_239] : memref<8x128xf32, #tpu.memory_space<vmem>> -> memref<1x128xf32, #tpu.memory_space<vmem>>
    %378 = tpu.memref_squeeze %377 : memref<1x128xf32, #tpu.memory_space<vmem>> -> memref<128xf32, #tpu.memory_space<vmem>>
    %379 = tpu.memref_slice %arg11[%c0_i32_237] : memref<3x!tpu.dma_semaphore, #tpu.memory_space<semaphore_mem>> -> memref<1x!tpu.dma_semaphore, #tpu.memory_space<semaphore_mem>>
    %380 = tpu.memref_squeeze %379 : memref<1x!tpu.dma_semaphore, #tpu.memory_space<semaphore_mem>> -> memref<!tpu.dma_semaphore, #tpu.memory_space<semaphore_mem>>
    tpu.wait_dma2 semaphore(%380 : memref<!tpu.dma_semaphore, #tpu.memory_space<semaphore_mem>>) src(%376 : memref<128xf32, #tpu.memory_space<any>>) dst(%378 : memref<128xf32, #tpu.memory_space<vmem>>)
    %c0_i32_240 = arith.constant 0 : i32
    %c1_i32_241 = arith.constant 1 : i32
    %c0_i32_242 = arith.constant 0 : i32
    %381 = tpu.memref_slice %arg3[%c0_i32_240, %c0_i32_242] : memref<9x8xf32, #tpu.memory_space<any>> -> memref<1x8xf32, #tpu.memory_space<any>>
    %382 = tpu.memref_squeeze %381 : memref<1x8xf32, #tpu.memory_space<any>> -> memref<8xf32, #tpu.memory_space<any>>
    %c0_i32_243 = arith.constant 0 : i32
    %383 = tpu.memref_slice %arg9[%c7_i32_235, %c0_i32_243] : memref<8x8xf32, #tpu.memory_space<vmem>> -> memref<1x8xf32, #tpu.memory_space<vmem>>
    %384 = tpu.memref_squeeze %383 : memref<1x8xf32, #tpu.memory_space<vmem>> -> memref<8xf32, #tpu.memory_space<vmem>>
    %385 = tpu.memref_slice %arg11[%c1_i32_241] : memref<3x!tpu.dma_semaphore, #tpu.memory_space<semaphore_mem>> -> memref<1x!tpu.dma_semaphore, #tpu.memory_space<semaphore_mem>>
    %386 = tpu.memref_squeeze %385 : memref<1x!tpu.dma_semaphore, #tpu.memory_space<semaphore_mem>> -> memref<!tpu.dma_semaphore, #tpu.memory_space<semaphore_mem>>
    tpu.wait_dma2 semaphore(%386 : memref<!tpu.dma_semaphore, #tpu.memory_space<semaphore_mem>>) src(%382 : memref<8xf32, #tpu.memory_space<any>>) dst(%384 : memref<8xf32, #tpu.memory_space<vmem>>)
    %c0_i32_244 = arith.constant 0 : i32
    %c2_i32_245 = arith.constant 2 : i32
    %c0_i32_246 = arith.constant 0 : i32
    %387 = tpu.memref_slice %arg4[%c0_i32_244, %c0_i32_246] : memref<9x8xf32, #tpu.memory_space<any>> -> memref<1x8xf32, #tpu.memory_space<any>>
    %388 = tpu.memref_squeeze %387 : memref<1x8xf32, #tpu.memory_space<any>> -> memref<8xf32, #tpu.memory_space<any>>
    %c0_i32_247 = arith.constant 0 : i32
    %389 = tpu.memref_slice %arg10[%c7_i32_235, %c0_i32_247] : memref<8x8xf32, #tpu.memory_space<vmem>> -> memref<1x8xf32, #tpu.memory_space<vmem>>
    %390 = tpu.memref_squeeze %389 : memref<1x8xf32, #tpu.memory_space<vmem>> -> memref<8xf32, #tpu.memory_space<vmem>>
    %391 = tpu.memref_slice %arg11[%c2_i32_245] : memref<3x!tpu.dma_semaphore, #tpu.memory_space<semaphore_mem>> -> memref<1x!tpu.dma_semaphore, #tpu.memory_space<semaphore_mem>>
    %392 = tpu.memref_squeeze %391 : memref<1x!tpu.dma_semaphore, #tpu.memory_space<semaphore_mem>> -> memref<!tpu.dma_semaphore, #tpu.memory_space<semaphore_mem>>
    tpu.wait_dma2 semaphore(%392 : memref<!tpu.dma_semaphore, #tpu.memory_space<semaphore_mem>>) src(%388 : memref<8xf32, #tpu.memory_space<any>>) dst(%390 : memref<8xf32, #tpu.memory_space<vmem>>)
    %c8_i32_248 = arith.constant 8 : i32
    %c0 = arith.constant 0 : index
    %c0_249 = arith.constant 0 : index
    %393 = vector.load %arg8[%c0, %c0_249] : memref<8x128xf32, #tpu.memory_space<vmem>>, vector<8x128xf32>
    %c0_250 = arith.constant 0 : index
    %c0_251 = arith.constant 0 : index
    %394 = vector.load %arg9[%c0_250, %c0_251] : memref<8x8xf32, #tpu.memory_space<vmem>>, vector<8x8xf32>
    %395 = arith.truncf %394 : vector<8x8xf32> to vector<8x8xbf16>
    %c0_252 = arith.constant 0 : index
    %c0_253 = arith.constant 0 : index
    %396 = vector.load %arg5[%c0_252, %c0_253] : memref<8x128xbf16, #tpu.memory_space<vmem>>, vector<8x128xbf16>
    %cst = arith.constant dense<0.000000e+00> : vector<8x128xf32>
    %397 = tpu.matmul %395, %396, %cst {dimension_numbers = #tpu.dot_dimension_numbers<[1], [0], [0], [1], [0, 0, 1, 1], [], []>} : vector<8x8xbf16>, vector<8x128xbf16>, vector<8x128xf32> -> vector<8x128xf32>
    %398 = arith.addf %393, %397 : vector<8x128xf32>
    %c0_254 = arith.constant 0 : index
    %c0_255 = arith.constant 0 : index
    %399 = vector.load %arg10[%c0_254, %c0_255] : memref<8x8xf32, #tpu.memory_space<vmem>>, vector<8x8xf32>
    %400 = arith.truncf %399 : vector<8x8xf32> to vector<8x8xbf16>
    %c0_256 = arith.constant 0 : index
    %c0_257 = arith.constant 0 : index
    %401 = vector.load %arg6[%c0_256, %c0_257] : memref<8x128xbf16, #tpu.memory_space<vmem>>, vector<8x128xbf16>
    %cst_258 = arith.constant dense<0.000000e+00> : vector<8x128xf32>
    %402 = tpu.matmul %400, %401, %cst_258 {dimension_numbers = #tpu.dot_dimension_numbers<[1], [0], [0], [1], [0, 0, 1, 1], [], []>} : vector<8x8xbf16>, vector<8x128xbf16>, vector<8x128xf32> -> vector<8x128xf32>
    %403 = arith.addf %398, %402 : vector<8x128xf32>
    %c0_259 = arith.constant 0 : index
    %c0_260 = arith.constant 0 : index
    %404 = vector.load %arg7[%c0_259, %c0_260] : memref<8x128xf32, #tpu.memory_space<vmem>>, vector<8x128xf32>
    tpu.vector_store %arg7[%c0_259, %c0_260], %403 {strides = array<i32>} : memref<8x128xf32, #tpu.memory_space<vmem>>, vector<8x128xf32>,
    return
  }
  func.func @transform_3(%arg0: i32, %arg1: memref<16xi32, #tpu.memory_space<smem>>) -> (i32, i32) {
    %c0_i32 = arith.constant 0 : i32
    %c0_i32_0 = arith.constant 0 : i32
    %c0_i32_1 = arith.constant 0 : i32
    return %c0_i32, %c0_i32_0 : i32, i32
  }
  func.func @transform_4(%arg0: i32, %arg1: memref<16xi32, #tpu.memory_space<smem>>) -> (i32, i32) {
    %c0_i32 = arith.constant 0 : i32
    %c0_i32_0 = arith.constant 0 : i32
    %c0_i32_1 = arith.constant 0 : i32
    return %c0_i32, %c0_i32_0 : i32, i32
  }
  func.func @transform_5(%arg0: i32, %arg1: memref<16xi32, #tpu.memory_space<smem>>) -> (i32, i32) {
    %c0_i32 = arith.constant 0 : i32
    %c0_i32_0 = arith.constant 0 : i32
    return %arg0, %c0_i32 : i32, i32
  }
}

</mosaic_0001>

<bundles_post_ra>
// kernel: tpu_custom_call.1
= control target key start
LH: loop header
LB: loop body
LE: loop exit
PB: predicated region body
PF: predicated region fallthrough
CT: control target
= control target key end

     0   :  { %s2319_s0 = inlined_call_operand.vmem [shape: s32[16], index: 0, kind: input, shape index: {}]   ;;  %s2320_s1 = inlined_call_operand.vmem [shape: f32[9,128], index: 1, kind: input, shape index: {}]   ;;  %s2321_s2 = inlined_call_operand.vmem [shape: f32[9,8], index: 2, kind: input, shape index: {}]   ;;  %s2322_s3 = inlined_call_operand.vmem [shape: f32[9,8], index: 3, kind: input, shape index: {}]   ;;  %s2323_s4 = inlined_call_operand.vmem [shape: bf16[8,128], index: 4, kind: input, shape index: {}]   ;;  %s2324_s5 = inlined_call_operand.vmem [shape: bf16[8,128], index: 5, kind: input, shape index: {}]   ;;  %s2325_s6 = inlined_call_operand.hbm [shape: f32[16,128], index: 6, kind: output, shape index: {}]  }
   0x1   :  { %s11_s23 = sshll.u32 %s2319_s0, 4  ;;  %s12_s23 = int_to_ptr.vmem [resolvable:$true] %s11_s23 }
   0x2   :  { %s1956_s24 = scalar_lea.vmem %s12_s23, 16  ;;  %p1961_p1 = scmp.lt.s32.totalorder %s12_s23, %s12_s23 }
   0x3   :  { %p1957_p0 = scmp.ne.s32.totalorder %s12_s23, %s1956_s24  ;;  %p1962_p2 = scmp.lt.s32.totalorder %s1956_s24, %s1956_s24 }
   0x5   :  { %p1963_p3 = por %p1962_p2, %p1961_p1 }
   0x7   :  { %p1964_p4 = pnand %p1963_p3, %p1957_p0 }
   0x9   :  { %1967 = shalt.err (!%p1964_p4)  }
   0xa   :  { %s2082_s25 = smov [#allocation7]  }
   0xb   :  { %14 = dma.vmem_to_smem %s12_s23, 16, %s2082_s25, [#allocation6] }
   0xc   :  { %2012 = dma.done.wait [#allocation6], 16 }
   0xd   :  { %2013 = vsyncadd [#allocation6], 4294967280 }
   0xe   :  { %16 = sfence }
   0xf   :  { %17 = vsyncpa [#allocation9], 0 }
  0x10   :  { %19 = vsyncpa [#allocation9 + $0x1], 0  ;;  %s2124_s26 = smov 0   ;;  %s2126_s27 = smov 0  }
  0x11   :  { %s2128_s0 = smov 0   ;;  %s2130_s28 = smov 0  }
  0x12 LB: > { %s2145_s29 = sadd.s32 4294967295, %s2080_s28   ;;  %s1858_s30 = sadd.s32 4294967294, %s2080_s28   ;;  %s2080_s28 = sphi %s2130_s28, %s2331_s28   ;;  %s2076_s0 = sphi %s2128_s0, %s2330_s0   ;;  %s2072_s27 = sphi %s2126_s27, %s2329_s27   ;;  %s2068_s26 = sphi %s2124_s26, %s2328_s26  }
  0x13   : > { %s2149_s7 = sadd.s32 1, %s2080_s28   ;;  %s74_s8 = sadd.s32 1, %s2076_s0 }
  0x14   : > { %s71_s9 = ssub.s32 %s2080_s28, %s2149_s7  ;;  %p84_p5 = scmp.ne.s32.totalorder %s2076_s0, %s2072_s27 }
  0x15   : > { %p72_p6 = scmp.eq.s32.totalorder %s71_s9, 0  ;;  %p85_p7 = scmp.eq.s32.totalorder %s2145_s29, 1 }
  0x16   : > { %p90_p8 = scmp.ne.s32.totalorder %s2072_s27, %s2068_s26  ;;  %p91_p9 = scmp.eq.s32.totalorder %s1858_s30, 1 }
  0x17   : > { %s2160_s10 = scalar_select %p72_p6, %s2076_s0, %s74_s8  }
  0x18   : > { %p2162_p10 = por %p85_p7, %p84_p5  ;;  %p2166_p11 = por %p91_p9, %p90_p8 }
  0x19   : > { %p1860_p12 = scmp.ge.s32.totalorder %s2080_s28, 1  ;;  %p115_p13 = scmp.lt.s32.totalorder %s2080_s28, 3 }
  0x1b   : > { %p116_p0 = pnand %p1860_p12, %p115_p13 }
  0x1c   : > { %s129_s13 = sand.u32 (!%p116_p0), 1, %s2072_s27   ;;  %s2174_s14 = sshll.u32 (!%p116_p0), %s2145_s29, 3 }
  0x1d   : > { %119 = sbr.rel (%p116_p0) target bundleno = 473 (0x1d9), region = 28  ;;  %s2178_s15 = sshll.u32 (!%p116_p0), %s129_s13, 3 }
  0x1e   : > { %s134_s16 = sld [smem:[#allocation7 + %s2174_s14]] (!%p116_p0)  ;;  %s131_s23 = scalar_lea.vmem (!%p116_p0), [#allocation8], %s2178_s15 }
  0x24   : > { %p135_p1 = scmp.lt.s32.totalorder %s134_s16, 8  ;;  %p137_p2 = scmp.ge.s32.totalorder %s134_s16, 8 }
  0x25   : > { %p138_p3 = scmp.lt.s32.totalorder %s134_s16, 16  ;;  %s1863_s17 = sadd.s32 4294967288, %s134_s16 }
  0x26   : > { %s136_s18 = scalar_select %p135_p1, %s134_s16, 8 }
  0x27   : > { %p139_p4 = pnand %p138_p3, %p137_p2  ;;  %p143_p5 = scmp.ge.s32.totalorder %s134_s16, 16 }
  0x28   : > { %s1865_s19 = sadd.s32 4294967280, %s134_s16  ;;  %s146_s22 = scalar_lea.vmem %s2320_s1, %s136_s18 }
  0x29   : > { %s2333_s17 = smov (%p139_p4, %s1863_s17), 8  ;;  %v164_v0 = vld [vmem:[%s146_s22] sm:$0x1]  ;;  %s2335_s19 = smov (!%p143_p5, %s1865_s19), 8 }
  0x2a   : > { %165 = vst [vmem:[#allocation2] sm:$0x1] %v164_v0 }
  0x2b   : > { %190 = vsyncadd [#allocation5], 16  ;;  %s191_s30 = scalar_lea.vmem %s2321_s2, %s2333_s17 }
  0x2c   : > { %v210_v1 = vld [vmem:[%s191_s30] sm:$0x1] }
  0x2d   : > { %211 = vst [vmem:[#allocation3] sm:$0x1] %v210_v1 }
  0x2e   : > { %236 = vsyncadd [#allocation5 + $0x1], 16  ;;  %s237_s16 = scalar_lea.vmem %s2322_s3, %s2335_s19 }
  0x2f   : > { %v256_v2 = vld [vmem:[%s237_s16] sm:$0x1] }
  0x30   : > { %257 = vst [vmem:[#allocation4] sm:$0x1] %v256_v2 }
  0x31   : > { %282 = vsyncadd [#allocation5 + $0x2], 16  ;;  %s283_s18 = sadd.s32 1, %s2174_s14 }
  0x32   : > { %s284_s20 = sld [smem:[#allocation7 + %s283_s18]] }
  0x38   : > { %p285_p6 = scmp.lt.s32.totalorder %s284_s20, 8  ;;  %p287_p7 = scmp.ge.s32.totalorder %s284_s20, 8 }
  0x39   : > { %p288_p8 = scmp.lt.s32.totalorder %s284_s20, 16  ;;  %s1866_s21 = sadd.s32 4294967288, %s284_s20 }
  0x3a   : > { %s286_s22 = scalar_select %p285_p6, %s284_s20, 8 }
  0x3b   : > { %p289_p9 = pnand %p288_p8, %p287_p7  ;;  %p293_p12 = scmp.ge.s32.totalorder %s284_s20, 16 }
  0x3c   : > { %s1868_s17 = sadd.s32 4294967280, %s284_s20  ;;  %s296_s30 = scalar_lea.vmem %s2320_s1, %s286_s22 }
  0x3d   : > { %s2337_s21 = smov (%p289_p9, %s1866_s21), 8  ;;  %v315_v3 = vld [vmem:[%s296_s30] sm:$0x1]  ;;  %s2339_s17 = smov (!%p293_p12, %s1868_s17), 8 }
  0x3e   : > { %316 = vst [vmem:[#allocation2 + $0x1] sm:$0x1] %v315_v3 }
  0x3f   : > { %341 = vsyncadd [#allocation5], 16  ;;  %s342_s9 = scalar_lea.vmem %s2321_s2, %s2337_s21 }
  0x40   : > { %v361_v4 = vld [vmem:[%s342_s9] sm:$0x1] }
  0x41   : > { %362 = vst [vmem:[#allocation3 + $0x1] sm:$0x1] %v361_v4 }
  0x42   : > { %387 = vsyncadd [#allocation5 + $0x1], 16  ;;  %s388_s20 = scalar_lea.vmem %s2322_s3, %s2339_s17 }
  0x43   : > { %v407_v5 = vld [vmem:[%s388_s20] sm:$0x1] }
  0x44   : > { %408 = vst [vmem:[#allocation4 + $0x1] sm:$0x1] %v407_v5 }
  0x45   : > { %433 = vsyncadd [#allocation5 + $0x2], 16  ;;  %s434_s22 = sadd.s32 2, %s2174_s14 }
  0x46   : > { %s435_s24 = sld [smem:[#allocation7 + %s434_s22]] }
  0x4c   : > { %p436_p13 = scmp.lt.s32.totalorder %s435_s24, 8  ;;  %p438_p0 = scmp.ge.s32.totalorder %s435_s24, 8 }
  0x4d   : > { %p439_p1 = scmp.lt.s32.totalorder %s435_s24, 16  ;;  %s1869_s25 = sadd.s32 4294967288, %s435_s24 }
  0x4e   : > { %s437_s30 = scalar_select %p436_p13, %s435_s24, 8 }
  0x4f   : > { %p440_p2 = pnand %p439_p1, %p438_p0  ;;  %p444_p3 = scmp.ge.s32.totalorder %s435_s24, 16 }
  0x50   : > { %s1871_s21 = sadd.s32 4294967280, %s435_s24  ;;  %s447_s9 = scalar_lea.vmem %s2320_s1, %s437_s30 }
  0x51   : > { %s2341_s25 = smov (%p440_p2, %s1869_s25), 8  ;;  %v466_v6 = vld [vmem:[%s447_s9] sm:$0x1]  ;;  %s2343_s21 = smov (!%p444_p3, %s1871_s21), 8 }
  0x52   : > { %467 = vst [vmem:[#allocation2 + $0x2] sm:$0x1] %v466_v6 }
  0x53   : > { %492 = vsyncadd [#allocation5], 16  ;;  %s493_s18 = scalar_lea.vmem %s2321_s2, %s2341_s25 }
  0x54   : > { %v512_v7 = vld [vmem:[%s493_s18] sm:$0x1] }
  0x55   : > { %513 = vst [vmem:[#allocation3 + $0x2] sm:$0x1] %v512_v7 }
  0x56   : > { %538 = vsyncadd [#allocation5 + $0x1], 16  ;;  %s539_s24 = scalar_lea.vmem %s2322_s3, %s2343_s21 }
  0x57   : > { %v558_v8 = vld [vmem:[%s539_s24] sm:$0x1] }
  0x58   : > { %559 = vst [vmem:[#allocation4 + $0x2] sm:$0x1] %v558_v8 }
  0x59   : > { %584 = vsyncadd [#allocation5 + $0x2], 16  ;;  %s585_s30 = sadd.s32 3, %s2174_s14 }
  0x5a   : > { %s586_s19 = sld [smem:[#allocation7 + %s585_s30]] }
  0x60   : > { %p587_p4 = scmp.lt.s32.totalorder %s586_s19, 8  ;;  %p589_p5 = scmp.ge.s32.totalorder %s586_s19, 8 }
  0x61   : > { %p590_p6 = scmp.lt.s32.totalorder %s586_s19, 16  ;;  %s1872_s8 = sadd.s32 4294967288, %s586_s19 }
  0x62   : > { %s588_s9 = scalar_select %p587_p4, %s586_s19, 8 }
  0x63   : > { %p591_p7 = pnand %p590_p6, %p589_p5  ;;  %p595_p8 = scmp.ge.s32.totalorder %s586_s19, 16 }
  0x64   : > { %s1874_s25 = sadd.s32 4294967280, %s586_s19  ;;  %s598_s18 = scalar_lea.vmem %s2320_s1, %s588_s9 }
  0x65   : > { %s2345_s8 = smov (%p591_p7, %s1872_s8), 8  ;;  %v617_v9 = vld [vmem:[%s598_s18] sm:$0x1]  ;;  %s2347_s25 = smov (!%p595_p8, %s1874_s25), 8 }
  0x66   : > { %618 = vst [vmem:[#allocation2 + $0x3] sm:$0x1] %v617_v9 }
  0x67   : > { %643 = vsyncadd [#allocation5], 16  ;;  %s644_s22 = scalar_lea.vmem %s2321_s2, %s2345_s8 }
  0x68   : > { %v663_v10 = vld [vmem:[%s644_s22] sm:$0x1] }
  0x69   : > { %664 = vst [vmem:[#allocation3 + $0x3] sm:$0x1] %v663_v10 }
  0x6a   : > { %689 = vsyncadd [#allocation5 + $0x1], 16  ;;  %s690_s19 = scalar_lea.vmem %s2322_s3, %s2347_s25 }
  0x6b   : > { %v709_v11 = vld [vmem:[%s690_s19] sm:$0x1] }
  0x6c   : > { %710 = vst [vmem:[#allocation4 + $0x3] sm:$0x1] %v709_v11 }
  0x6d   : > { %735 = vsyncadd [#allocation5 + $0x2], 16  ;;  %s736_s9 = sadd.s32 4, %s2174_s14 }
  0x6e   : > { %s737_s17 = sld [smem:[#allocation7 + %s736_s9]] }
  0x74   : > { %p738_p9 = scmp.lt.s32.totalorder %s737_s17, 8  ;;  %p740_p12 = scmp.ge.s32.totalorder %s737_s17, 8 }
  0x75   : > { %p741_p13 = scmp.lt.s32.totalorder %s737_s17, 16  ;;  %s1875_s16 = sadd.s32 4294967288, %s737_s17 }
  0x76   : > { %s739_s18 = scalar_select %p738_p9, %s737_s17, 8 }
  0x77   : > { %p742_p0 = pnand %p741_p13, %p740_p12  ;;  %p746_p1 = scmp.ge.s32.totalorder %s737_s17, 16 }
  0x78   : > { %s1877_s8 = sadd.s32 4294967280, %s737_s17  ;;  %s749_s22 = scalar_lea.vmem %s2320_s1, %s739_s18 }
  0x79   : > { %s2349_s16 = smov (%p742_p0, %s1875_s16), 8  ;;  %v768_v12 = vld [vmem:[%s749_s22] sm:$0x1]  ;;  %s2351_s8 = smov (!%p746_p1, %s1877_s8), 8 }
  0x7a   : > { %769 = vst [vmem:[#allocation2 + $0x4] sm:$0x1] %v768_v12 }
  0x7b   : > { %794 = vsyncadd [#allocation5], 16  ;;  %s795_s30 = scalar_lea.vmem %s2321_s2, %s2349_s16 }
  0x7c   : > { %v814_v13 = vld [vmem:[%s795_s30] sm:$0x1] }
  0x7d   : > { %815 = vst [vmem:[#allocation3 + $0x4] sm:$0x1] %v814_v13 }
  0x7e   : > { %840 = vsyncadd [#allocation5 + $0x1], 16  ;;  %s841_s17 = scalar_lea.vmem %s2322_s3, %s2351_s8 }
  0x7f   : > { %v860_v14 = vld [vmem:[%s841_s17] sm:$0x1] }
  0x80   : > { %861 = vst [vmem:[#allocation4 + $0x4] sm:$0x1] %v860_v14 }
  0x81   : > { %886 = vsyncadd [#allocation5 + $0x2], 16  ;;  %s887_s18 = sadd.s32 5, %s2174_s14 }
  0x82   : > { %s888_s21 = sld [smem:[#allocation7 + %s887_s18]] }
  0x88   : > { %p889_p2 = scmp.lt.s32.totalorder %s888_s21, 8  ;;  %p891_p3 = scmp.ge.s32.totalorder %s888_s21, 8 }
  0x89   : > { %p892_p4 = scmp.lt.s32.totalorder %s888_s21, 16  ;;  %s1878_s20 = sadd.s32 4294967288, %s888_s21 }
  0x8a   : > { %s890_s22 = scalar_select %p889_p2, %s888_s21, 8 }
  0x8b   : > { %p893_p5 = pnand %p892_p4, %p891_p3  ;;  %p897_p6 = scmp.ge.s32.totalorder %s888_s21, 16 }
  0x8c   : > { %s1880_s16 = sadd.s32 4294967280, %s888_s21  ;;  %s900_s30 = scalar_lea.vmem %s2320_s1, %s890_s22 }
  0x8d   : > { %s2353_s20 = smov (%p893_p5, %s1878_s20), 8  ;;  %v919_v15 = vld [vmem:[%s900_s30] sm:$0x1]  ;;  %s2355_s16 = smov (!%p897_p6, %s1880_s16), 8 }
  0x8e   : > { %920 = vst [vmem:[#allocation2 + $0x5] sm:$0x1] %v919_v15 }
  0x8f   : > { %945 = vsyncadd [#allocation5], 16  ;;  %s946_s9 = scalar_lea.vmem %s2321_s2, %s2353_s20 }
  0x90   : > { %v965_v16 = vld [vmem:[%s946_s9] sm:$0x1] }
  0x91   : > { %966 = vst [vmem:[#allocation3 + $0x5] sm:$0x1] %v965_v16 }
  0x92   : > { %991 = vsyncadd [#allocation5 + $0x1], 16  ;;  %s992_s21 = scalar_lea.vmem %s2322_s3, %s2355_s16 }
  0x93   : > { %v1011_v17 = vld [vmem:[%s992_s21] sm:$0x1] }
  0x94   : > { %1012 = vst [vmem:[#allocation4 + $0x5] sm:$0x1] %v1011_v17 }
  0x95   : > { %1037 = vsyncadd [#allocation5 + $0x2], 16  ;;  %s1038_s22 = sadd.s32 6, %s2174_s14 }
  0x96   : > { %s1039_s25 = sld [smem:[#allocation7 + %s1038_s22]] }
  0x9c   : > { %p1040_p7 = scmp.lt.s32.totalorder %s1039_s25, 8  ;;  %p1042_p8 = scmp.ge.s32.totalorder %s1039_s25, 8 }
  0x9d   : > { %p1043_p9 = scmp.lt.s32.totalorder %s1039_s25, 16  ;;  %s1881_s24 = sadd.s32 4294967288, %s1039_s25 }
  0x9e   : > { %s1041_s30 = scalar_select %p1040_p7, %s1039_s25, 8 }
  0x9f   : > { %p1044_p12 = pnand %p1043_p9, %p1042_p8  ;;  %p1048_p13 = scmp.ge.s32.totalorder %s1039_s25, 16 }
  0xa0   : > { %s1883_s20 = sadd.s32 4294967280, %s1039_s25  ;;  %s1051_s9 = scalar_lea.vmem %s2320_s1, %s1041_s30 }
  0xa1   : > { %s2357_s24 = smov (%p1044_p12, %s1881_s24), 8  ;;  %v1070_v18 = vld [vmem:[%s1051_s9] sm:$0x1]  ;;  %s2359_s20 = smov (!%p1048_p13, %s1883_s20), 8 }
  0xa2   : > { %1071 = vst [vmem:[#allocation2 + $0x6] sm:$0x1] %v1070_v18 }
  0xa3   : > { %1096 = vsyncadd [#allocation5], 16  ;;  %s1097_s18 = scalar_lea.vmem %s2321_s2, %s2357_s24 }
  0xa4   : > { %v1116_v19 = vld [vmem:[%s1097_s18] sm:$0x1] }
  0xa5   : > { %1117 = vst [vmem:[#allocation3 + $0x6] sm:$0x1] %v1116_v19 }
  0xa6   : > { %1142 = vsyncadd [#allocation5 + $0x1], 16  ;;  %s1143_s25 = scalar_lea.vmem %s2322_s3, %s2359_s20 }
  0xa7   : > { %v1162_v20 = vld [vmem:[%s1143_s25] sm:$0x1] }
  0xa8   : > { %1163 = vst [vmem:[#allocation4 + $0x6] sm:$0x1] %v1162_v20 }
  0xa9   : > { %1188 = vsyncadd [#allocation5 + $0x2], 16  ;;  %s1189_s30 = sadd.s32 7, %s2174_s14 }
  0xaa   : > { %s1190_s8 = sld [smem:[#allocation7 + %s1189_s30]] }
  0xb0   : > { %p1191_p0 = scmp.lt.s32.totalorder %s1190_s8, 8  ;;  %p1193_p1 = scmp.ge.s32.totalorder %s1190_s8, 8 }
  0xb1   : > { %p1194_p2 = scmp.lt.s32.totalorder %s1190_s8, 16  ;;  %s1884_s19 = sadd.s32 4294967288, %s1190_s8 }
  0xb2   : > { %s1192_s9 = scalar_select %p1191_p0, %s1190_s8, 8 }
  0xb3   : > { %p1195_p3 = pnand %p1194_p2, %p1193_p1  ;;  %p1199_p4 = scmp.ge.s32.totalorder %s1190_s8, 16 }
  0xb4   : > { %s1886_s24 = sadd.s32 4294967280, %s1190_s8  ;;  %s1202_s18 = scalar_lea.vmem %s2320_s1, %s1192_s9 }
  0xb5   : > { %s2361_s19 = smov (%p1195_p3, %s1884_s19), 8  ;;  %v1221_v21 = vld [vmem:[%s1202_s18] sm:$0x1]  ;;  %s2363_s24 = smov (!%p1199_p4, %s1886_s24), 8 }
  0xb6   : > { %1222 = vst [vmem:[#allocation2 + $0x7] sm:$0x1] %v1221_v21 }
  0xb7   : > { %1247 = vsyncadd [#allocation5], 16  ;;  %s1248_s21 = scalar_lea.vmem %s2321_s2, %s2361_s19 }
  0xb8   : > { %v1267_v22 = vld [vmem:[%s1248_s21] sm:$0x1] }
  0xb9   : > { %1268 = vst [vmem:[#allocation3 + $0x7] sm:$0x1] %v1267_v22 }
  0xba   : > { %1293 = vsyncadd [#allocation5 + $0x1], 16  ;;  %s1294_s30 = scalar_lea.vmem %s2322_s3, %s2363_s24 }
  0xbb   : > { %v1313_v23 = vld [vmem:[%s1294_s30] sm:$0x1] }
  0xbc   : > { %1314 = vst [vmem:[#allocation4 + $0x7] sm:$0x1] %v1313_v23 }
  0xbd   : > { %1339 = vsyncadd [#allocation5 + $0x2], 16 }
  0xbe   : > { %2014 = dma.done.wait [#allocation5], 16 }
  0xbf   : > { %2015 = vsyncadd [#allocation5], 4294967280 }
  0xc0   : > { %2016 = dma.done.wait [#allocation5 + $0x1], 16 }
  0xc1   : > { %2017 = vsyncadd [#allocation5 + $0x1], 4294967280 }
  0xc2   : > { %2018 = dma.done.wait [#allocation5 + $0x2], 16 }
  0xc3   : > { %2019 = vsyncadd [#allocation5 + $0x2], 4294967280 }
  0xc4   : > { %2020 = dma.done.wait [#allocation5], 16 }
  0xc5   : > { %2021 = vsyncadd [#allocation5], 4294967280 }
  0xc6   : > { %2022 = dma.done.wait [#allocation5 + $0x1], 16 }
  0xc7   : > { %2023 = vsyncadd [#allocation5 + $0x1], 4294967280 }
  0xc8   : > { %2024 = dma.done.wait [#allocation5 + $0x2], 16 }
  0xc9   : > { %2025 = vsyncadd [#allocation5 + $0x2], 4294967280 }
  0xca   : > { %2026 = dma.done.wait [#allocation5], 16 }
  0xcb   : > { %2027 = vsyncadd [#allocation5], 4294967280 }
  0xcc   : > { %2028 = dma.done.wait [#allocation5 + $0x1], 16 }
  0xcd   : > { %2029 = vsyncadd [#allocation5 + $0x1], 4294967280 }
  0xce   : > { %2030 = dma.done.wait [#allocation5 + $0x2], 16 }
  0xcf   : > { %2031 = vsyncadd [#allocation5 + $0x2], 4294967280 }
  0xd0   : > { %2032 = dma.done.wait [#allocation5], 16 }
  0xd1   : > { %2033 = vsyncadd [#allocation5], 4294967280 }
  0xd2   : > { %2034 = dma.done.wait [#allocation5 + $0x1], 16 }
  0xd3   : > { %2035 = vsyncadd [#allocation5 + $0x1], 4294967280 }
  0xd4   : > { %2036 = dma.done.wait [#allocation5 + $0x2], 16 }
  0xd5   : > { %2037 = vsyncadd [#allocation5 + $0x2], 4294967280 }
  0xd6   : > { %2038 = dma.done.wait [#allocation5], 16 }
  0xd7   : > { %2039 = vsyncadd [#allocation5], 4294967280 }
  0xd8   : > { %2040 = dma.done.wait [#allocation5 + $0x1], 16 }
  0xd9   : > { %2041 = vsyncadd [#allocation5 + $0x1], 4294967280 }
  0xda   : > { %2042 = dma.done.wait [#allocation5 + $0x2], 16 }
  0xdb   : > { %2043 = vsyncadd [#allocation5 + $0x2], 4294967280 }
  0xdc   : > { %2044 = dma.done.wait [#allocation5], 16 }
  0xdd   : > { %2045 = vsyncadd [#allocation5], 4294967280 }
  0xde   : > { %2046 = dma.done.wait [#allocation5 + $0x1], 16 }
  0xdf   : > { %2047 = vsyncadd [#allocation5 + $0x1], 4294967280 }
  0xe0   : > { %2048 = dma.done.wait [#allocation5 + $0x2], 16 }
  0xe1   : > { %2049 = vsyncadd [#allocation5 + $0x2], 4294967280 }
  0xe2   : > { %2050 = dma.done.wait [#allocation5], 16 }
  0xe3   : > { %2051 = vsyncadd [#allocation5], 4294967280 }
  0xe4   : > { %2052 = dma.done.wait [#allocation5 + $0x1], 16 }
  0xe5   : > { %2053 = vsyncadd [#allocation5 + $0x1], 4294967280 }
  0xe6   : > { %2054 = dma.done.wait [#allocation5 + $0x2], 16 }
  0xe7   : > { %2055 = vsyncadd [#allocation5 + $0x2], 4294967280 }
  0xe8   : > { %2056 = dma.done.wait [#allocation5], 16 }
  0xe9   : > { %2057 = vsyncadd [#allocation5], 4294967280 }
  0xea   : > { %2058 = dma.done.wait [#allocation5 + $0x1], 16 }
  0xeb   : > { %2059 = vsyncadd [#allocation5 + $0x1], 4294967280 }
  0xec   : > { %2060 = dma.done.wait [#allocation5 + $0x2], 16 }
  0xed   : > { %2061 = vsyncadd [#allocation5 + $0x2], 4294967280  ;;  %v2083_v24 = vmov 0.0   ;;  %vm2084_vm0 = vmmov 0   ;;  %vm1396_vm1 = vcmask 1043456   ;;  %v1389_v27 = vld [vmem:[#allocation3] sm:$0xff] }
  0xee   : > { %1900 = vmatprep.subr.bf16.mxu1 %v2083_v24  ;;  %1906 = vmatprep.subr.bf16.mxu0 %v2083_v24  ;;  %v1391_v25 = vld [vmem:[%s2323_s4] sm:$0xf]  ;;  %v1390_v30 = vpack.c.bf16 %v1389_v27, %v1389_v27  ;;  %v1441_v31 = vld [vmem:[#allocation4] sm:$0xff]  ;;  %vm1392_vm2 = vcmask 64512   ;;  %s1890_s16 = sshll.u32 %s2145_s29, 7  ;;  %s1506_s17 = sshll.u32 %s131_s23, 4  ;;  %s2275_s17 = int_to_ptr.vmem [resolvable:$true] %s1506_s17 }
  0xef   : > { %1902 = vmatprep.mubr.msk.bf16.mxu1 %vm2084_vm0, %v2083_v24  ;;  %1908 = vmatprep.mubr.msk.bf16.mxu0 %vm2084_vm0, %v2083_v24  ;;  %v1443_v26 = vld [vmem:[%s2324_s5] sm:$0xf]  ;;  %v1398_v28 = vsel %vm1396_vm1, %v1391_v25, 0  ;;  %v1442_v32 = vpack.c.bf16 %v1441_v31, %v1441_v31  ;;  %s2273_s14 = scalar_lea.hbm %s2325_s6, %s1890_s16  ;;  %s1493_s29 = scalar_lea.sflag [#allocation9], %s129_s13 }
  0xf0   : > { %v1448_v29 = vsel %vm1396_vm1, %v1443_v26, 0  ;;  %1901 = vmatpush3.bf16.msra.mxu1 %v1398_v28  ;;  %v1388_v33 = vld [vmem:[#allocation2] sm:$0xff]  ;;  %s1968_s21 = scalar_lea.vmem %s2275_s17, 128  ;;  %s2085_s22 = smov [#allocation8]  }
  0xf1   : > { %1907 = vmatpush3.bf16.msra.mxu0 %v1448_v29  ;;  %p1969_p5 = scmp.ne.s32.totalorder %s2275_s17, %s1968_s21  ;;  %s1972_s25 = sshll.u32 %s2085_s22, 4  ;;  %s1973_s25 = int_to_ptr.vmem [resolvable:$false] %s1972_s25 }
  0xf2   : > { %s1974_s30 = scalar_lea.vmem %s1973_s25, 256  ;;  %p1975_p8 = scmp.lt.s32.totalorder %s2275_s17, %s1973_s25 }
  0xf3   : > { %1903 = vmatmul.mubr.msk.bf16.vlgmr.msra.gmra.mrb[0].mxu1 %vm1392_vm2, %v1390_v30  ;;  %p1970_p6 = pnand %p1969_p5, %p2162_p10  ;;  %p1976_p9 = scmp.lt.s32.totalorder %s1974_s30, %s1968_s21 }
  0xf4   : > { %1909 = vmatmul.mubr.msk.bf16.vlgmr.msra.gmra.mrb[0].mxu0 %vm1392_vm2, %v1442_v32 }
  0xf5   : > { %p1971_p7 = pneg %p1970_p6  ;;  %p1977_p12 = por %p1976_p9, %p1975_p8 }
  0xf7   : > { %p1978_p13 = pnand %p1977_p12, %p1971_p7 }
 0x1c6   : > { %v1434_v34 = vpop.f32.mrb[0].mxu1 }
 0x1c7   : > { %v1484_v35 = vpop.f32.mrb[0].mxu0  ;;  %v1440_v36 = vadd.f32 %v1434_v34, %v1388_v33  ;;  %v1904_v37 = vpop.f32.mrb[1].mxu1 }
 0x1c8   : > { %v1910_v38 = vpop.f32.mrb[1].mxu0  ;;  %v1437_v39 = vpop.f32.mrb[2].mxu1 }
 0x1c9   : > { %v1487_v40 = vpop.f32.mrb[2].mxu0  ;;  %v1490_v41 = vadd.f32 %v1484_v35, %v1440_v36  ;;  %v1905_v42 = vpop.f32.mrb[3].mxu1 }
 0x1ca   : > { %v1911_v43 = vpop.f32.mrb[3].mxu0 }
 0x1cb   : > { %1491 = vst [vmem:[%s131_s23] sm:$0xff] %v1490_v41 }
 0x1cc   : > { %1981 = shalt.err (!%p1978_p13)
}
 0x1cd   : > { %s1982_s13 = scalar_lea.hbm %s2273_s14, 128  ;;  %s1986_s8 = scalar_lea.hbm %s2325_s6, 256 }
 0x1ce   : > { %p1983_p0 = scmp.ne.s32.totalorder %s2273_s14, %s1982_s13  ;;  %p1987_p3 = scmp.lt.u32.totalorder %s2273_s14, %s2325_s6 }
 0x1cf   : > { %p1988_p4 = scmp.lt.u32.totalorder %s1986_s8, %s1982_s13  ;;  %p1990_p6 = scmp.lt.u32.totalorder %s1982_s13, %s2273_s14 }
 0x1d0   : > { %p1984_p1 = pnand %p1983_p0, %p2162_p10 }
 0x1d1   : > { %p1989_p5 = por %p1988_p4, %p1987_p3 }
 0x1d2   : > { %p1985_p2 = pneg %p1984_p1 }
 0x1d3   : > { %p1991_p7 = por %p1990_p6, %p1989_p5 }
 0x1d5   : > { %p1992_p8 = pnand %p1991_p7, %p1985_p2 }
 0x1d7   : > { %1995 = shalt.err (!%p1992_p8)
}
 0x1d8   : > { %1914 = dma.vmem_to_hbm [thread:$0]  (%p2162_p10), %s2275_s17, 128, %s2273_s14, %s1493_s29  }
 0x1d9 PF: > { %p1920_p9 = scmp.ge.s32.totalorder %s2080_s28, 2  ;;  %s1518_s24 = sand.u32 1, %s2068_s26  }
 0x1da   : > { %s1519_s16 = scalar_lea.sflag [#allocation9], %s1518_s24 }
 0x1db   : > { %p1917_p12 = pnand %p1920_p9, %p2166_p11 }
 0x1dd   : > { %2063 = dma.done.wait (!%p1917_p12), %s1519_s16, 128  }
 0x1de   : > { %2065 = vsyncadd (!%p1917_p12), %s1519_s16, 4294967168  ;;  %p22_p13 = scmp.ge.s32.totalorder %s2149_s7, 4   ;;  %s2328_s26 = smov %s2072_s27 }
 0x1df   : > { %s2329_s27 = smov %s2076_s0  ;;  %s2330_s0 = smov %s2160_s10 }
 0x1e0   : > { %s2331_s28 = smov %s2149_s7  ;;  %24 = sbr.rel (!%p22_p13) target bundleno = 18 (0x12), region = 1069 }
 0x1e7   :  { %1524 = vsyncpa [#allocation9], 1 }
 0x1e8   :  { %1526 = vsyncpa [#allocation9 + $0x1], 1 }
 0x1e9   :  { %1527 = vsyncmov [#allocation5] }
 0x1ec   :  { %s1528_s28 = vpop.sfrf %1527 }
 0x1ed   :  { %p1893_p10 = scmp.ne.s32.totalorder %s1528_s28, 0 }
 0x1ef   :  { %1532 = shalt.err (%p1893_p10)  }
 0x1f0   :  { %1534 = vsyncmov [#allocation5 + $0x1] }
 0x1f3   :  { %s1535_s11 = vpop.sfrf %1534 }
 0x1f4   :  { %p1894_p11 = scmp.ne.s32.totalorder %s1535_s11, 0 }
 0x1f6   :  { %1539 = shalt.err (%p1894_p11)  }
 0x1f7   :  { %1541 = vsyncmov [#allocation5 + $0x2] }
 0x1fa   :  { %s1542_s12 = vpop.sfrf %1541 }
 0x1fb   :  { %p1895_p0 = scmp.ne.s32.totalorder %s1542_s12, 0 }
 0x1fd   :  { %1546 = shalt.err (%p1895_p0)  }

</bundles_post_ra>
